<compile_context>
chip_gen: v7x
topology: tpu7x:2x2x1
jax: 0.10.0
libtpu: 0.0.40
codegen_flags: <defaults>
</compile_context>

<pallas_src>
import functools

import jax
import jax.numpy as jnp
from jax.experimental import pallas as pl
from jax.experimental.pallas import tpu as pltpu


# ----------------------------- in-kernel helpers -----------------------------

def _layernorm(x, gamma, beta, eps=1e-5):
    # f32 statistics (matches nn.LayerNorm defaults).
    mu = jnp.mean(x, axis=-1, keepdims=True)
    var = jnp.mean((x - mu) ** 2, axis=-1, keepdims=True)
    return (x - mu) * jax.lax.rsqrt(var + eps) * gamma + beta


# ------------------------- fully fused forward kernel -------------------------

def attention_former_kernel(x_ref, cross_ref, *rest, n_heads, n_layers, has_tail):
    if has_tail:
        (wq, bq, wk, bk, wv, bv, wo, bo,
         w1, b1, w2, b2, g1, be1, g2, be2,
         gn, bn, wp, bp, o_ref) = rest
    else:
        (wq, bq, wk, bk, wv, bv, wo, bo,
         w1, b1, w2, b2, g1, be1, g2, be2, o_ref) = rest

    x = x_ref[0]                                   # (L, D) f32 activation, stays resident
    c_bf = cross_ref[0].astype(jnp.bfloat16)       # cross is layer-invariant: cast once
    L, D = x.shape
    S = c_bf.shape[0]
    hd = D // n_heads
    scale = hd ** -0.5

    # Static unroll over layers: x never leaves VMEM/vregs between layers.
    for l in range(n_layers):
        x_bf = x.astype(jnp.bfloat16)

        # QKV projections (bf16 MXU matmuls, f32 accumulation, f32 bias add)
        q = jnp.dot(x_bf, wq[l], preferred_element_type=jnp.float32) + bq[l]
        k = jnp.dot(c_bf, wk[l], preferred_element_type=jnp.float32) + bk[l]
        v = jnp.dot(c_bf, wv[l], preferred_element_type=jnp.float32) + bv[l]

        # Per-head split (relayout is cheap/acceptable at hd=8; lane-dense for hd>=128).
        qh = q.astype(jnp.bfloat16).reshape(L, n_heads, hd)
        kh = k.astype(jnp.bfloat16).reshape(S, n_heads, hd)
        vh = v.astype(jnp.bfloat16).reshape(S, n_heads, hd)

        # Multi-head scaled dot-product attention (full, unmasked), softmax in f32.
        scores = jnp.einsum('lhd,shd->hls', qh, kh,
                            preferred_element_type=jnp.float32) * scale
        scores = scores - jnp.max(scores, axis=-1, keepdims=True)
        p = jnp.exp(scores)
        denom = jnp.sum(p, axis=-1, keepdims=True)
        p = p * pl.reciprocal(denom, approx=True)          # EUP slot, not VALU

        attn = jnp.einsum('hls,shd->lhd', p.astype(jnp.bfloat16), vh,
                          preferred_element_type=jnp.float32).reshape(L, D)
        attn = jnp.dot(attn.astype(jnp.bfloat16), wo[l],
                       preferred_element_type=jnp.float32) + bo[l]

        # residual + LayerNorm (f32)
        x1 = _layernorm(x + attn, g1[l], be1[l])

        # position-wise FFN (ReLU), bf16 matmuls with f32 accumulation
        h = jnp.maximum(
            jnp.dot(x1.astype(jnp.bfloat16), w1[l],
                    preferred_element_type=jnp.float32) + b1[l], 0.0)
        y = jnp.dot(h.astype(jnp.bfloat16), w2[l],
                    preferred_element_type=jnp.float32) + b2[l]
        x = _layernorm(x1 + y, g2[l], be2[l])

        # residual_trend (second layer output) is discarded by the container — not computed.

    if has_tail:
        # Fused final LayerNorm + projection; wp/bp are lane-padded to a multiple of 128
        # so this store is unmasked/lane-dense.
        xn = _layernorm(x, gn[...], bn[...])
        o_ref[0] = jnp.dot(xn.astype(jnp.bfloat16), wp[...],
                           preferred_element_type=jnp.float32) + bp[...]
    else:
        o_ref[0] = x


# ------------------------------- host-side wrapper -----------------------------

_WEIGHT_NAMES = ('wq', 'bq', 'wk', 'bk', 'wv', 'bv', 'wo', 'bo',
                 'w1', 'b1', 'w2', 'b2', 'g1', 'be1', 'g2', 'be2')
_MATMUL_WEIGHTS = ('wq', 'wk', 'wv', 'wo', 'w1', 'w2')


def _stack_layer_params(layer_params):
    """Stack per-layer params with a leading layer axis; matmul weights -> bf16."""
    stacked = []
    for name in _WEIGHT_NAMES:
        a = jnp.stack([lp[name] for lp in layer_params], axis=0)
        if name in _MATMUL_WEIGHTS:
            a = a.astype(jnp.bfloat16)
        stacked.append(a)
    return stacked


def _pad_last_dim_to(a, mult):
    pad = (-a.shape[-1]) % mult
    if pad:
        a = jnp.pad(a, [(0, 0)] * (a.ndim - 1) + [(0, pad)])
    return a


def attention_former_forward(x, cross, layer_params, norm_params, proj_params,
                             n_heads, trend=None):
    """Full AttentionFormer forward as a single fused Pallas kernel call."""
    B, L, D = x.shape
    S = cross.shape[1]
    n_layers = len(layer_params)

    stacked = _stack_layer_params(layer_params)

    has_tail = (norm_params is not None) and (proj_params is not None)
    if has_tail:
        c_out = proj_params['w'].shape[1]
        wp = _pad_last_dim_to(proj_params['w'].astype(jnp.bfloat16), 128)
        bp = _pad_last_dim_to(proj_params['b'], 128)
        tail = [norm_params['g'], norm_params['b'], wp, bp]
        out_dim = wp.shape[1]                      # lane-dense multiple of 128
    else:
        tail = []
        out_dim = D

    invariant = stacked + tail
    in_specs = (
        [pl.BlockSpec((1, L, D), lambda b: (b, 0, 0)),     # x
         pl.BlockSpec((1, S, D), lambda b: (b, 0, 0))]     # cross
        # grid-invariant weights: full-block, constant index_map
        + [pl.BlockSpec(a.shape, lambda b, n=a.ndim: (0,) * n) for a in invariant]
    )

    kernel = functools.partial(attention_former_kernel,
                               n_heads=n_heads, n_layers=n_layers, has_tail=has_tail)

    out = pl.pallas_call(
        kernel,
        out_shape=jax.ShapeDtypeStruct((B, L, out_dim), jnp.float32),
        grid=(B,),
        in_specs=in_specs,
        out_specs=pl.BlockSpec((1, L, out_dim), lambda b: (b, 0, 0)),
        compiler_params=pltpu.CompilerParams(
            dimension_semantics=("parallel",),          # batch axis -> both v7x TCs
            vmem_limit_bytes=32 * 1024 * 1024),
    )(x, cross, *invariant)

    if has_tail:
        out = out[..., :c_out]                          # strip lane padding
    return out, trend


# ------------------------------- param creation --------------------------------

def make_params(key, d_model, d_ff, c_out, n_layers):
    def dense(k, fan_in, fan_out):
        return 0.02 * jax.random.normal(k, (fan_in, fan_out), dtype=jnp.float32)

    layer_params = []
    keys = jax.random.split(key, n_layers + 1)
    for lk in keys[:n_layers]:
        ks = jax.random.split(lk, 6)
        layer_params.append(dict(
            wq=dense(ks[0], d_model, d_model), bq=jnp.zeros((1, d_model), jnp.float32),
            wk=dense(ks[1], d_model, d_model), bk=jnp.zeros((1, d_model), jnp.float32),
            wv=dense(ks[2], d_model, d_model), bv=jnp.zeros((1, d_model), jnp.float32),
            wo=dense(ks[3], d_model, d_model), bo=jnp.zeros((1, d_model), jnp.float32),
            w1=dense(ks[4], d_model, d_ff),    b1=jnp.zeros((1, d_ff), jnp.float32),
            w2=dense(ks[5], d_ff, d_model),    b2=jnp.zeros((1, d_model), jnp.float32),
            g1=jnp.ones((1, d_model), jnp.float32), be1=jnp.zeros((1, d_model), jnp.float32),
            g2=jnp.ones((1, d_model), jnp.float32), be2=jnp.zeros((1, d_model), jnp.float32),
        ))
    pk = keys[-1]
    norm_params = dict(g=jnp.ones((1, d_model), jnp.float32),
                       b=jnp.zeros((1, d_model), jnp.float32))
    proj_params = dict(w=0.02 * jax.random.normal(pk, (d_model, c_out), jnp.float32),
                       b=jnp.zeros((1, c_out), jnp.float32))
    return layer_params, norm_params, proj_params


# ------------------------------------ main --------------------------------------

if __name__ == "__main__":
    B, L, S, D = 2, 8, 16, 32          # batch, target seq, cross seq, d_model
    d_ff, c_out, n_heads, n_layers = 64, 8, 4, 2

    key = jax.random.PRNGKey(0)
    kx, kc, kt, kp = jax.random.split(key, 4)
    x = jax.random.normal(kx, (B, L, D), dtype=jnp.float32)
    cross = jax.random.normal(kc, (B, S, D), dtype=jnp.float32)
    trend = jax.random.normal(kt, (B, L, c_out), dtype=jnp.float32)

    layer_params, norm_params, proj_params = make_params(kp, D, d_ff, c_out, n_layers)

    out, trend_out = attention_former_forward(
        x, cross, layer_params, norm_params, proj_params, n_heads, trend=trend)
    out = jax.block_until_ready(out)
    trend_out = jax.block_until_ready(trend_out)

    assert out.shape == (B, L, c_out)
    assert trend_out.shape == (B, L, c_out)
    assert bool(jnp.all(jnp.isfinite(out)))
    print("KERNEL_OK")
</pallas_src>

<mosaic_0001>
module attributes {stable_mosaic.version = 11 : i64} {
  func.func @attention_former_kernel(%arg0: i32, %arg1: memref<1x8x32xf32, #tpu.memory_space<vmem>>, %arg2: memref<1x16x32xf32, #tpu.memory_space<vmem>>, %arg3: memref<2x32x32xbf16, #tpu.memory_space<vmem>>, %arg4: memref<2x1x32xf32, #tpu.memory_space<vmem>>, %arg5: memref<2x32x32xbf16, #tpu.memory_space<vmem>>, %arg6: memref<2x1x32xf32, #tpu.memory_space<vmem>>, %arg7: memref<2x32x32xbf16, #tpu.memory_space<vmem>>, %arg8: memref<2x1x32xf32, #tpu.memory_space<vmem>>, %arg9: memref<2x32x32xbf16, #tpu.memory_space<vmem>>, %arg10: memref<2x1x32xf32, #tpu.memory_space<vmem>>, %arg11: memref<2x32x64xbf16, #tpu.memory_space<vmem>>, %arg12: memref<2x1x64xf32, #tpu.memory_space<vmem>>, %arg13: memref<2x64x32xbf16, #tpu.memory_space<vmem>>, %arg14: memref<2x1x32xf32, #tpu.memory_space<vmem>>, %arg15: memref<2x1x32xf32, #tpu.memory_space<vmem>>, %arg16: memref<2x1x32xf32, #tpu.memory_space<vmem>>, %arg17: memref<2x1x32xf32, #tpu.memory_space<vmem>>, %arg18: memref<2x1x32xf32, #tpu.memory_space<vmem>>, %arg19: memref<1x32xf32, #tpu.memory_space<vmem>>, %arg20: memref<1x32xf32, #tpu.memory_space<vmem>>, %arg21: memref<32x128xbf16, #tpu.memory_space<vmem>>, %arg22: memref<1x128xf32, #tpu.memory_space<vmem>>, %arg23: memref<1x8x128xf32, #tpu.memory_space<vmem>>) attributes {dimension_semantics = [#tpu.dimension_semantics<parallel>], iteration_bounds = array<i64: 2>, scalar_prefetch = 0 : i64, scratch_operands = 0 : i64, tpu.core_type = #tpu.core_type<tc>, window_params = [{transform_indices = @transform_0, window_bounds = array<i64: 1, 8, 32>}, {transform_indices = @transform_1, window_bounds = array<i64: 1, 16, 32>}, {pipeline_mode = #tpu.pipeline_mode<synchronous>, transform_indices = @transform_2, window_bounds = array<i64: 2, 32, 32>}, {pipeline_mode = #tpu.pipeline_mode<synchronous>, transform_indices = @transform_3, window_bounds = array<i64: 2, 1, 32>}, {pipeline_mode = #tpu.pipeline_mode<synchronous>, transform_indices = @transform_4, window_bounds = array<i64: 2, 32, 32>}, {pipeline_mode = #tpu.pipeline_mode<synchronous>, transform_indices = @transform_5, window_bounds = array<i64: 2, 1, 32>}, {pipeline_mode = #tpu.pipeline_mode<synchronous>, transform_indices = @transform_6, window_bounds = array<i64: 2, 32, 32>}, {pipeline_mode = #tpu.pipeline_mode<synchronous>, transform_indices = @transform_7, window_bounds = array<i64: 2, 1, 32>}, {pipeline_mode = #tpu.pipeline_mode<synchronous>, transform_indices = @transform_8, window_bounds = array<i64: 2, 32, 32>}, {pipeline_mode = #tpu.pipeline_mode<synchronous>, transform_indices = @transform_9, window_bounds = array<i64: 2, 1, 32>}, {pipeline_mode = #tpu.pipeline_mode<synchronous>, transform_indices = @transform_10, window_bounds = array<i64: 2, 32, 64>}, {pipeline_mode = #tpu.pipeline_mode<synchronous>, transform_indices = @transform_11, window_bounds = array<i64: 2, 1, 64>}, {pipeline_mode = #tpu.pipeline_mode<synchronous>, transform_indices = @transform_12, window_bounds = array<i64: 2, 64, 32>}, {pipeline_mode = #tpu.pipeline_mode<synchronous>, transform_indices = @transform_13, window_bounds = array<i64: 2, 1, 32>}, {pipeline_mode = #tpu.pipeline_mode<synchronous>, transform_indices = @transform_14, window_bounds = array<i64: 2, 1, 32>}, {pipeline_mode = #tpu.pipeline_mode<synchronous>, transform_indices = @transform_15, window_bounds = array<i64: 2, 1, 32>}, {pipeline_mode = #tpu.pipeline_mode<synchronous>, transform_indices = @transform_16, window_bounds = array<i64: 2, 1, 32>}, {pipeline_mode = #tpu.pipeline_mode<synchronous>, transform_indices = @transform_17, window_bounds = array<i64: 2, 1, 32>}, {pipeline_mode = #tpu.pipeline_mode<synchronous>, transform_indices = @transform_18, window_bounds = array<i64: 1, 32>}, {pipeline_mode = #tpu.pipeline_mode<synchronous>, transform_indices = @transform_19, window_bounds = array<i64: 1, 32>}, {pipeline_mode = #tpu.pipeline_mode<synchronous>, transform_indices = @transform_20, window_bounds = array<i64: 32, 128>}, {pipeline_mode = #tpu.pipeline_mode<synchronous>, transform_indices = @transform_21, window_bounds = array<i64: 1, 128>}, {transform_indices = @transform_22, window_bounds = array<i64: 1, 8, 128>}]} {
    %c0 = arith.constant 0 : index
    %c0_0 = arith.constant 0 : index
    %c0_1 = arith.constant 0 : index
    %0 = vector.load %arg1[%c0, %c0_0, %c0_1] : memref<1x8x32xf32, #tpu.memory_space<vmem>>, vector<1x8x32xf32>
    %1 = vector.shape_cast %0 : vector<1x8x32xf32> to vector<8x32xf32>
    %c0_2 = arith.constant 0 : index
    %c0_3 = arith.constant 0 : index
    %c0_4 = arith.constant 0 : index
    %2 = vector.load %arg2[%c0_2, %c0_3, %c0_4] : memref<1x16x32xf32, #tpu.memory_space<vmem>>, vector<1x16x32xf32>
    %3 = vector.shape_cast %2 : vector<1x16x32xf32> to vector<16x32xf32>
    %4 = arith.truncf %3 : vector<16x32xf32> to vector<16x32xbf16>
    %5 = arith.truncf %1 : vector<8x32xf32> to vector<8x32xbf16>
    %c0_5 = arith.constant 0 : index
    %c0_6 = arith.constant 0 : index
    %c0_7 = arith.constant 0 : index
    %6 = vector.load %arg3[%c0_5, %c0_6, %c0_7] : memref<2x32x32xbf16, #tpu.memory_space<vmem>>, vector<1x32x32xbf16>
    %7 = vector.shape_cast %6 : vector<1x32x32xbf16> to vector<32x32xbf16>
    %cst = arith.constant dense<0.000000e+00> : vector<8x32xf32>
    %8 = tpu.matmul %5, %7, %cst {dimension_numbers = #tpu.dot_dimension_numbers<[1], [0], [0], [1], [0, 0, 1, 1], [], []>} : vector<8x32xbf16>, vector<32x32xbf16>, vector<8x32xf32> -> vector<8x32xf32>
    %c0_8 = arith.constant 0 : index
    %c0_9 = arith.constant 0 : index
    %c0_10 = arith.constant 0 : index
    %9 = vector.load %arg4[%c0_8, %c0_9, %c0_10] : memref<2x1x32xf32, #tpu.memory_space<vmem>>, vector<1x1x32xf32>
    %10 = vector.shape_cast %9 : vector<1x1x32xf32> to vector<1x32xf32>
    %11 = vector.broadcast %10 : vector<1x32xf32> to vector<8x32xf32>
    %12 = arith.addf %8, %11 : vector<8x32xf32>
    %c0_11 = arith.constant 0 : index
    %c0_12 = arith.constant 0 : index
    %c0_13 = arith.constant 0 : index
    %13 = vector.load %arg5[%c0_11, %c0_12, %c0_13] : memref<2x32x32xbf16, #tpu.memory_space<vmem>>, vector<1x32x32xbf16>
    %14 = vector.shape_cast %13 : vector<1x32x32xbf16> to vector<32x32xbf16>
    %cst_14 = arith.constant dense<0.000000e+00> : vector<16x32xf32>
    %15 = tpu.matmul %4, %14, %cst_14 {dimension_numbers = #tpu.dot_dimension_numbers<[1], [0], [0], [1], [0, 0, 1, 1], [], []>} : vector<16x32xbf16>, vector<32x32xbf16>, vector<16x32xf32> -> vector<16x32xf32>
    %c0_15 = arith.constant 0 : index
    %c0_16 = arith.constant 0 : index
    %c0_17 = arith.constant 0 : index
    %16 = vector.load %arg6[%c0_15, %c0_16, %c0_17] : memref<2x1x32xf32, #tpu.memory_space<vmem>>, vector<1x1x32xf32>
    %17 = vector.shape_cast %16 : vector<1x1x32xf32> to vector<1x32xf32>
    %18 = vector.broadcast %17 : vector<1x32xf32> to vector<16x32xf32>
    %19 = arith.addf %15, %18 : vector<16x32xf32>
    %c0_18 = arith.constant 0 : index
    %c0_19 = arith.constant 0 : index
    %c0_20 = arith.constant 0 : index
    %20 = vector.load %arg7[%c0_18, %c0_19, %c0_20] : memref<2x32x32xbf16, #tpu.memory_space<vmem>>, vector<1x32x32xbf16>
    %21 = vector.shape_cast %20 : vector<1x32x32xbf16> to vector<32x32xbf16>
    %cst_21 = arith.constant dense<0.000000e+00> : vector<16x32xf32>
    %22 = tpu.matmul %4, %21, %cst_21 {dimension_numbers = #tpu.dot_dimension_numbers<[1], [0], [0], [1], [0, 0, 1, 1], [], []>} : vector<16x32xbf16>, vector<32x32xbf16>, vector<16x32xf32> -> vector<16x32xf32>
    %c0_22 = arith.constant 0 : index
    %c0_23 = arith.constant 0 : index
    %c0_24 = arith.constant 0 : index
    %23 = vector.load %arg8[%c0_22, %c0_23, %c0_24] : memref<2x1x32xf32, #tpu.memory_space<vmem>>, vector<1x1x32xf32>
    %24 = vector.shape_cast %23 : vector<1x1x32xf32> to vector<1x32xf32>
    %25 = vector.broadcast %24 : vector<1x32xf32> to vector<16x32xf32>
    %26 = arith.addf %22, %25 : vector<16x32xf32>
    %27 = arith.truncf %12 : vector<8x32xf32> to vector<8x32xbf16>
    %28 = vector.shape_cast %27 : vector<8x32xbf16> to vector<8x4x8xbf16>
    %29 = arith.truncf %19 : vector<16x32xf32> to vector<16x32xbf16>
    %30 = vector.shape_cast %29 : vector<16x32xbf16> to vector<16x4x8xbf16>
    %31 = arith.truncf %26 : vector<16x32xf32> to vector<16x32xbf16>
    %32 = vector.shape_cast %31 : vector<16x32xbf16> to vector<16x4x8xbf16>
    "tpu.trace_start"() <{level = 10 : i32, message = "lhd,shd->hls"}> : () -> ()
    %cst_25 = arith.constant dense<0.000000e+00> : vector<4x8x16xf32>
    %33 = tpu.matmul %28, %30, %cst_25 {dimension_numbers = #tpu.dot_dimension_numbers<[2], [2], [0], [0], [0, 1, 0, 0, 1, 0], [1], [1]>} : vector<8x4x8xbf16>, vector<16x4x8xbf16>, vector<4x8x16xf32> -> vector<4x8x16xf32>
    "tpu.trace_stop"() : () -> ()
    %cst_26 = arith.constant 0.353553385 : f32
    %34 = vector.broadcast %cst_26 : f32 to vector<4x8x16xf32>
    %35 = arith.mulf %33, %34 : vector<4x8x16xf32>
    %cst_27 = arith.constant dense<0xFF800000> : vector<4x8xf32>
    %36 = vector.multi_reduction <maximumf>, %35, %cst_27 [2] : vector<4x8x16xf32> to vector<4x8xf32>
    %37 = vector.shape_cast %36 : vector<4x8xf32> to vector<4x8x1xf32>
    %38 = vector.broadcast %37 : vector<4x8x1xf32> to vector<4x8x16xf32>
    %39 = arith.subf %35, %38 : vector<4x8x16xf32>
    %40 = math.exp %39 : vector<4x8x16xf32>
    %cst_28 = arith.constant dense<0.000000e+00> : vector<4x8xf32>
    %41 = vector.multi_reduction <add>, %40, %cst_28 [2] : vector<4x8x16xf32> to vector<4x8xf32>
    %42 = vector.shape_cast %41 : vector<4x8xf32> to vector<4x8x1xf32>
    %43 = tpu.reciprocal %42 {approx = true} : vector<4x8x1xf32> -> vector<4x8x1xf32>
    %44 = vector.broadcast %43 : vector<4x8x1xf32> to vector<4x8x16xf32>
    %45 = arith.mulf %40, %44 : vector<4x8x16xf32>
    %46 = arith.truncf %45 : vector<4x8x16xf32> to vector<4x8x16xbf16>
    "tpu.trace_start"() <{level = 10 : i32, message = "hls,shd->lhd"}> : () -> ()
    %cst_29 = arith.constant dense<0.000000e+00> : vector<4x8x8xf32>
    %47 = tpu.matmul %32, %46, %cst_29 {dimension_numbers = #tpu.dot_dimension_numbers<[0], [2], [2], [1], [0, 1, 0, 2, 1, 1], [1], [0]>} : vector<16x4x8xbf16>, vector<4x8x16xbf16>, vector<4x8x8xf32> -> vector<4x8x8xf32>
    %48 = tpu.transpose %47, [2, 0, 1] : vector<4x8x8xf32> -> vector<8x4x8xf32>
    "tpu.trace_stop"() : () -> ()
    %49 = vector.shape_cast %48 : vector<8x4x8xf32> to vector<8x32xf32>
    %50 = arith.truncf %49 : vector<8x32xf32> to vector<8x32xbf16>
    %c0_30 = arith.constant 0 : index
    %c0_31 = arith.constant 0 : index
    %c0_32 = arith.constant 0 : index
    %51 = vector.load %arg9[%c0_30, %c0_31, %c0_32] : memref<2x32x32xbf16, #tpu.memory_space<vmem>>, vector<1x32x32xbf16>
    %52 = vector.shape_cast %51 : vector<1x32x32xbf16> to vector<32x32xbf16>
    %cst_33 = arith.constant dense<0.000000e+00> : vector<8x32xf32>
    %53 = tpu.matmul %50, %52, %cst_33 {dimension_numbers = #tpu.dot_dimension_numbers<[1], [0], [0], [1], [0, 0, 1, 1], [], []>} : vector<8x32xbf16>, vector<32x32xbf16>, vector<8x32xf32> -> vector<8x32xf32>
    %c0_34 = arith.constant 0 : index
    %c0_35 = arith.constant 0 : index
    %c0_36 = arith.constant 0 : index
    %54 = vector.load %arg10[%c0_34, %c0_35, %c0_36] : memref<2x1x32xf32, #tpu.memory_space<vmem>>, vector<1x1x32xf32>
    %55 = vector.shape_cast %54 : vector<1x1x32xf32> to vector<1x32xf32>
    %56 = vector.broadcast %55 : vector<1x32xf32> to vector<8x32xf32>
    %57 = arith.addf %53, %56 : vector<8x32xf32>
    %58 = arith.addf %1, %57 : vector<8x32xf32>
    %c0_37 = arith.constant 0 : index
    %c0_38 = arith.constant 0 : index
    %c0_39 = arith.constant 0 : index
    %59 = vector.load %arg15[%c0_37, %c0_38, %c0_39] : memref<2x1x32xf32, #tpu.memory_space<vmem>>, vector<1x1x32xf32>
    %60 = vector.shape_cast %59 : vector<1x1x32xf32> to vector<1x32xf32>
    %c0_40 = arith.constant 0 : index
    %c0_41 = arith.constant 0 : index
    %c0_42 = arith.constant 0 : index
    %61 = vector.load %arg16[%c0_40, %c0_41, %c0_42] : memref<2x1x32xf32, #tpu.memory_space<vmem>>, vector<1x1x32xf32>
    %62 = vector.shape_cast %61 : vector<1x1x32xf32> to vector<1x32xf32>
    %cst_43 = arith.constant dense<0.000000e+00> : vector<8xf32>
    %63 = vector.multi_reduction <add>, %58, %cst_43 [1] : vector<8x32xf32> to vector<8xf32>
    %64 = vector.shape_cast %63 : vector<8xf32> to vector<8x1xf32>
    %cst_44 = arith.constant 3.200000e+01 : f32
    %65 = vector.broadcast %cst_44 : f32 to vector<8x1xf32>
    %66 = arith.divf %64, %65 : vector<8x1xf32>
    %67 = vector.broadcast %66 : vector<8x1xf32> to vector<8x32xf32>
    %68 = arith.subf %58, %67 : vector<8x32xf32>
    %69 = arith.mulf %68, %68 : vector<8x32xf32>
    %cst_45 = arith.constant dense<0.000000e+00> : vector<8xf32>
    %70 = vector.multi_reduction <add>, %69, %cst_45 [1] : vector<8x32xf32> to vector<8xf32>
    %71 = vector.shape_cast %70 : vector<8xf32> to vector<8x1xf32>
    %cst_46 = arith.constant 3.200000e+01 : f32
    %72 = vector.broadcast %cst_46 : f32 to vector<8x1xf32>
    %73 = arith.divf %71, %72 : vector<8x1xf32>
    %74 = vector.broadcast %66 : vector<8x1xf32> to vector<8x32xf32>
    %75 = arith.subf %58, %74 : vector<8x32xf32>
    %cst_47 = arith.constant 9.99999974E-6 : f32
    %76 = vector.broadcast %cst_47 : f32 to vector<8x1xf32>
    %77 = arith.addf %73, %76 : vector<8x1xf32>
    %78 = math.rsqrt %77 : vector<8x1xf32>
    %79 = vector.broadcast %78 : vector<8x1xf32> to vector<8x32xf32>
    %80 = arith.mulf %75, %79 : vector<8x32xf32>
    %81 = vector.broadcast %60 : vector<1x32xf32> to vector<8x32xf32>
    %82 = arith.mulf %80, %81 : vector<8x32xf32>
    %83 = vector.broadcast %62 : vector<1x32xf32> to vector<8x32xf32>
    %84 = arith.addf %82, %83 : vector<8x32xf32>
    %85 = arith.truncf %84 : vector<8x32xf32> to vector<8x32xbf16>
    %c0_48 = arith.constant 0 : index
    %c0_49 = arith.constant 0 : index
    %c0_50 = arith.constant 0 : index
    %86 = vector.load %arg11[%c0_48, %c0_49, %c0_50] : memref<2x32x64xbf16, #tpu.memory_space<vmem>>, vector<1x32x64xbf16>
    %87 = vector.shape_cast %86 : vector<1x32x64xbf16> to vector<32x64xbf16>
    %cst_51 = arith.constant dense<0.000000e+00> : vector<8x64xf32>
    %88 = tpu.matmul %85, %87, %cst_51 {dimension_numbers = #tpu.dot_dimension_numbers<[1], [0], [0], [1], [0, 0, 1, 1], [], []>} : vector<8x32xbf16>, vector<32x64xbf16>, vector<8x64xf32> -> vector<8x64xf32>
    %c0_52 = arith.constant 0 : index
    %c0_53 = arith.constant 0 : index
    %c0_54 = arith.constant 0 : index
    %89 = vector.load %arg12[%c0_52, %c0_53, %c0_54] : memref<2x1x64xf32, #tpu.memory_space<vmem>>, vector<1x1x64xf32>
    %90 = vector.shape_cast %89 : vector<1x1x64xf32> to vector<1x64xf32>
    %91 = vector.broadcast %90 : vector<1x64xf32> to vector<8x64xf32>
    %92 = arith.addf %88, %91 : vector<8x64xf32>
    %cst_55 = arith.constant 0.000000e+00 : f32
    %93 = vector.broadcast %cst_55 : f32 to vector<8x64xf32>
    %94 = arith.maximumf %92, %93 : vector<8x64xf32>
    %95 = arith.truncf %94 : vector<8x64xf32> to vector<8x64xbf16>
    %c0_56 = arith.constant 0 : index
    %c0_57 = arith.constant 0 : index
    %c0_58 = arith.constant 0 : index
    %96 = vector.load %arg13[%c0_56, %c0_57, %c0_58] : memref<2x64x32xbf16, #tpu.memory_space<vmem>>, vector<1x64x32xbf16>
    %97 = vector.shape_cast %96 : vector<1x64x32xbf16> to vector<64x32xbf16>
    %cst_59 = arith.constant dense<0.000000e+00> : vector<8x32xf32>
    %98 = tpu.matmul %95, %97, %cst_59 {dimension_numbers = #tpu.dot_dimension_numbers<[1], [0], [0], [1], [0, 0, 1, 1], [], []>} : vector<8x64xbf16>, vector<64x32xbf16>, vector<8x32xf32> -> vector<8x32xf32>
    %c0_60 = arith.constant 0 : index
    %c0_61 = arith.constant 0 : index
    %c0_62 = arith.constant 0 : index
    %99 = vector.load %arg14[%c0_60, %c0_61, %c0_62] : memref<2x1x32xf32, #tpu.memory_space<vmem>>, vector<1x1x32xf32>
    %100 = vector.shape_cast %99 : vector<1x1x32xf32> to vector<1x32xf32>
    %101 = vector.broadcast %100 : vector<1x32xf32> to vector<8x32xf32>
    %102 = arith.addf %98, %101 : vector<8x32xf32>
    %103 = arith.addf %84, %102 : vector<8x32xf32>
    %c0_63 = arith.constant 0 : index
    %c0_64 = arith.constant 0 : index
    %c0_65 = arith.constant 0 : index
    %104 = vector.load %arg17[%c0_63, %c0_64, %c0_65] : memref<2x1x32xf32, #tpu.memory_space<vmem>>, vector<1x1x32xf32>
    %105 = vector.shape_cast %104 : vector<1x1x32xf32> to vector<1x32xf32>
    %c0_66 = arith.constant 0 : index
    %c0_67 = arith.constant 0 : index
    %c0_68 = arith.constant 0 : index
    %106 = vector.load %arg18[%c0_66, %c0_67, %c0_68] : memref<2x1x32xf32, #tpu.memory_space<vmem>>, vector<1x1x32xf32>
    %107 = vector.shape_cast %106 : vector<1x1x32xf32> to vector<1x32xf32>
    %cst_69 = arith.constant dense<0.000000e+00> : vector<8xf32>
    %108 = vector.multi_reduction <add>, %103, %cst_69 [1] : vector<8x32xf32> to vector<8xf32>
    %109 = vector.shape_cast %108 : vector<8xf32> to vector<8x1xf32>
    %cst_70 = arith.constant 3.200000e+01 : f32
    %110 = vector.broadcast %cst_70 : f32 to vector<8x1xf32>
    %111 = arith.divf %109, %110 : vector<8x1xf32>
    %112 = vector.broadcast %111 : vector<8x1xf32> to vector<8x32xf32>
    %113 = arith.subf %103, %112 : vector<8x32xf32>
    %114 = arith.mulf %113, %113 : vector<8x32xf32>
    %cst_71 = arith.constant dense<0.000000e+00> : vector<8xf32>
    %115 = vector.multi_reduction <add>, %114, %cst_71 [1] : vector<8x32xf32> to vector<8xf32>
    %116 = vector.shape_cast %115 : vector<8xf32> to vector<8x1xf32>
    %cst_72 = arith.constant 3.200000e+01 : f32
    %117 = vector.broadcast %cst_72 : f32 to vector<8x1xf32>
    %118 = arith.divf %116, %117 : vector<8x1xf32>
    %119 = vector.broadcast %111 : vector<8x1xf32> to vector<8x32xf32>
    %120 = arith.subf %103, %119 : vector<8x32xf32>
    %cst_73 = arith.constant 9.99999974E-6 : f32
    %121 = vector.broadcast %cst_73 : f32 to vector<8x1xf32>
    %122 = arith.addf %118, %121 : vector<8x1xf32>
    %123 = math.rsqrt %122 : vector<8x1xf32>
    %124 = vector.broadcast %123 : vector<8x1xf32> to vector<8x32xf32>
    %125 = arith.mulf %120, %124 : vector<8x32xf32>
    %126 = vector.broadcast %105 : vector<1x32xf32> to vector<8x32xf32>
    %127 = arith.mulf %125, %126 : vector<8x32xf32>
    %128 = vector.broadcast %107 : vector<1x32xf32> to vector<8x32xf32>
    %129 = arith.addf %127, %128 : vector<8x32xf32>
    %130 = arith.truncf %129 : vector<8x32xf32> to vector<8x32xbf16>
    %c1 = arith.constant 1 : index
    %c0_74 = arith.constant 0 : index
    %c0_75 = arith.constant 0 : index
    %131 = vector.load %arg3[%c1, %c0_74, %c0_75] : memref<2x32x32xbf16, #tpu.memory_space<vmem>>, vector<1x32x32xbf16>
    %132 = vector.shape_cast %131 : vector<1x32x32xbf16> to vector<32x32xbf16>
    %cst_76 = arith.constant dense<0.000000e+00> : vector<8x32xf32>
    %133 = tpu.matmul %130, %132, %cst_76 {dimension_numbers = #tpu.dot_dimension_numbers<[1], [0], [0], [1], [0, 0, 1, 1], [], []>} : vector<8x32xbf16>, vector<32x32xbf16>, vector<8x32xf32> -> vector<8x32xf32>
    %c1_77 = arith.constant 1 : index
    %c0_78 = arith.constant 0 : index
    %c0_79 = arith.constant 0 : index
    %134 = vector.load %arg4[%c1_77, %c0_78, %c0_79] : memref<2x1x32xf32, #tpu.memory_space<vmem>>, vector<1x1x32xf32>
    %135 = vector.shape_cast %134 : vector<1x1x32xf32> to vector<1x32xf32>
    %136 = vector.broadcast %135 : vector<1x32xf32> to vector<8x32xf32>
    %137 = arith.addf %133, %136 : vector<8x32xf32>
    %c1_80 = arith.constant 1 : index
    %c0_81 = arith.constant 0 : index
    %c0_82 = arith.constant 0 : index
    %138 = vector.load %arg5[%c1_80, %c0_81, %c0_82] : memref<2x32x32xbf16, #tpu.memory_space<vmem>>, vector<1x32x32xbf16>
    %139 = vector.shape_cast %138 : vector<1x32x32xbf16> to vector<32x32xbf16>
    %cst_83 = arith.constant dense<0.000000e+00> : vector<16x32xf32>
    %140 = tpu.matmul %4, %139, %cst_83 {dimension_numbers = #tpu.dot_dimension_numbers<[1], [0], [0], [1], [0, 0, 1, 1], [], []>} : vector<16x32xbf16>, vector<32x32xbf16>, vector<16x32xf32> -> vector<16x32xf32>
    %c1_84 = arith.constant 1 : index
    %c0_85 = arith.constant 0 : index
    %c0_86 = arith.constant 0 : index
    %141 = vector.load %arg6[%c1_84, %c0_85, %c0_86] : memref<2x1x32xf32, #tpu.memory_space<vmem>>, vector<1x1x32xf32>
    %142 = vector.shape_cast %141 : vector<1x1x32xf32> to vector<1x32xf32>
    %143 = vector.broadcast %142 : vector<1x32xf32> to vector<16x32xf32>
    %144 = arith.addf %140, %143 : vector<16x32xf32>
    %c1_87 = arith.constant 1 : index
    %c0_88 = arith.constant 0 : index
    %c0_89 = arith.constant 0 : index
    %145 = vector.load %arg7[%c1_87, %c0_88, %c0_89] : memref<2x32x32xbf16, #tpu.memory_space<vmem>>, vector<1x32x32xbf16>
    %146 = vector.shape_cast %145 : vector<1x32x32xbf16> to vector<32x32xbf16>
    %cst_90 = arith.constant dense<0.000000e+00> : vector<16x32xf32>
    %147 = tpu.matmul %4, %146, %cst_90 {dimension_numbers = #tpu.dot_dimension_numbers<[1], [0], [0], [1], [0, 0, 1, 1], [], []>} : vector<16x32xbf16>, vector<32x32xbf16>, vector<16x32xf32> -> vector<16x32xf32>
    %c1_91 = arith.constant 1 : index
    %c0_92 = arith.constant 0 : index
    %c0_93 = arith.constant 0 : index
    %148 = vector.load %arg8[%c1_91, %c0_92, %c0_93] : memref<2x1x32xf32, #tpu.memory_space<vmem>>, vector<1x1x32xf32>
    %149 = vector.shape_cast %148 : vector<1x1x32xf32> to vector<1x32xf32>
    %150 = vector.broadcast %149 : vector<1x32xf32> to vector<16x32xf32>
    %151 = arith.addf %147, %150 : vector<16x32xf32>
    %152 = arith.truncf %137 : vector<8x32xf32> to vector<8x32xbf16>
    %153 = vector.shape_cast %152 : vector<8x32xbf16> to vector<8x4x8xbf16>
    %154 = arith.truncf %144 : vector<16x32xf32> to vector<16x32xbf16>
    %155 = vector.shape_cast %154 : vector<16x32xbf16> to vector<16x4x8xbf16>
    %156 = arith.truncf %151 : vector<16x32xf32> to vector<16x32xbf16>
    %157 = vector.shape_cast %156 : vector<16x32xbf16> to vector<16x4x8xbf16>
    "tpu.trace_start"() <{level = 10 : i32, message = "lhd,shd->hls"}> : () -> ()
    %cst_94 = arith.constant dense<0.000000e+00> : vector<4x8x16xf32>
    %158 = tpu.matmul %153, %155, %cst_94 {dimension_numbers = #tpu.dot_dimension_numbers<[2], [2], [0], [0], [0, 1, 0, 0, 1, 0], [1], [1]>} : vector<8x4x8xbf16>, vector<16x4x8xbf16>, vector<4x8x16xf32> -> vector<4x8x16xf32>
    "tpu.trace_stop"() : () -> ()
    %cst_95 = arith.constant 0.353553385 : f32
    %159 = vector.broadcast %cst_95 : f32 to vector<4x8x16xf32>
    %160 = arith.mulf %158, %159 : vector<4x8x16xf32>
    %cst_96 = arith.constant dense<0xFF800000> : vector<4x8xf32>
    %161 = vector.multi_reduction <maximumf>, %160, %cst_96 [2] : vector<4x8x16xf32> to vector<4x8xf32>
    %162 = vector.shape_cast %161 : vector<4x8xf32> to vector<4x8x1xf32>
    %163 = vector.broadcast %162 : vector<4x8x1xf32> to vector<4x8x16xf32>
    %164 = arith.subf %160, %163 : vector<4x8x16xf32>
    %165 = math.exp %164 : vector<4x8x16xf32>
    %cst_97 = arith.constant dense<0.000000e+00> : vector<4x8xf32>
    %166 = vector.multi_reduction <add>, %165, %cst_97 [2] : vector<4x8x16xf32> to vector<4x8xf32>
    %167 = vector.shape_cast %166 : vector<4x8xf32> to vector<4x8x1xf32>
    %168 = tpu.reciprocal %167 {approx = true} : vector<4x8x1xf32> -> vector<4x8x1xf32>
    %169 = vector.broadcast %168 : vector<4x8x1xf32> to vector<4x8x16xf32>
    %170 = arith.mulf %165, %169 : vector<4x8x16xf32>
    %171 = arith.truncf %170 : vector<4x8x16xf32> to vector<4x8x16xbf16>
    "tpu.trace_start"() <{level = 10 : i32, message = "hls,shd->lhd"}> : () -> ()
    %cst_98 = arith.constant dense<0.000000e+00> : vector<4x8x8xf32>
    %172 = tpu.matmul %157, %171, %cst_98 {dimension_numbers = #tpu.dot_dimension_numbers<[0], [2], [2], [1], [0, 1, 0, 2, 1, 1], [1], [0]>} : vector<16x4x8xbf16>, vector<4x8x16xbf16>, vector<4x8x8xf32> -> vector<4x8x8xf32>
    %173 = tpu.transpose %172, [2, 0, 1] : vector<4x8x8xf32> -> vector<8x4x8xf32>
    "tpu.trace_stop"() : () -> ()
    %174 = vector.shape_cast %173 : vector<8x4x8xf32> to vector<8x32xf32>
    %175 = arith.truncf %174 : vector<8x32xf32> to vector<8x32xbf16>
    %c1_99 = arith.constant 1 : index
    %c0_100 = arith.constant 0 : index
    %c0_101 = arith.constant 0 : index
    %176 = vector.load %arg9[%c1_99, %c0_100, %c0_101] : memref<2x32x32xbf16, #tpu.memory_space<vmem>>, vector<1x32x32xbf16>
    %177 = vector.shape_cast %176 : vector<1x32x32xbf16> to vector<32x32xbf16>
    %cst_102 = arith.constant dense<0.000000e+00> : vector<8x32xf32>
    %178 = tpu.matmul %175, %177, %cst_102 {dimension_numbers = #tpu.dot_dimension_numbers<[1], [0], [0], [1], [0, 0, 1, 1], [], []>} : vector<8x32xbf16>, vector<32x32xbf16>, vector<8x32xf32> -> vector<8x32xf32>
    %c1_103 = arith.constant 1 : index
    %c0_104 = arith.constant 0 : index
    %c0_105 = arith.constant 0 : index
    %179 = vector.load %arg10[%c1_103, %c0_104, %c0_105] : memref<2x1x32xf32, #tpu.memory_space<vmem>>, vector<1x1x32xf32>
    %180 = vector.shape_cast %179 : vector<1x1x32xf32> to vector<1x32xf32>
    %181 = vector.broadcast %180 : vector<1x32xf32> to vector<8x32xf32>
    %182 = arith.addf %178, %181 : vector<8x32xf32>
    %183 = arith.addf %129, %182 : vector<8x32xf32>
    %c1_106 = arith.constant 1 : index
    %c0_107 = arith.constant 0 : index
    %c0_108 = arith.constant 0 : index
    %184 = vector.load %arg15[%c1_106, %c0_107, %c0_108] : memref<2x1x32xf32, #tpu.memory_space<vmem>>, vector<1x1x32xf32>
    %185 = vector.shape_cast %184 : vector<1x1x32xf32> to vector<1x32xf32>
    %c1_109 = arith.constant 1 : index
    %c0_110 = arith.constant 0 : index
    %c0_111 = arith.constant 0 : index
    %186 = vector.load %arg16[%c1_109, %c0_110, %c0_111] : memref<2x1x32xf32, #tpu.memory_space<vmem>>, vector<1x1x32xf32>
    %187 = vector.shape_cast %186 : vector<1x1x32xf32> to vector<1x32xf32>
    %cst_112 = arith.constant dense<0.000000e+00> : vector<8xf32>
    %188 = vector.multi_reduction <add>, %183, %cst_112 [1] : vector<8x32xf32> to vector<8xf32>
    %189 = vector.shape_cast %188 : vector<8xf32> to vector<8x1xf32>
    %cst_113 = arith.constant 3.200000e+01 : f32
    %190 = vector.broadcast %cst_113 : f32 to vector<8x1xf32>
    %191 = arith.divf %189, %190 : vector<8x1xf32>
    %192 = vector.broadcast %191 : vector<8x1xf32> to vector<8x32xf32>
    %193 = arith.subf %183, %192 : vector<8x32xf32>
    %194 = arith.mulf %193, %193 : vector<8x32xf32>
    %cst_114 = arith.constant dense<0.000000e+00> : vector<8xf32>
    %195 = vector.multi_reduction <add>, %194, %cst_114 [1] : vector<8x32xf32> to vector<8xf32>
    %196 = vector.shape_cast %195 : vector<8xf32> to vector<8x1xf32>
    %cst_115 = arith.constant 3.200000e+01 : f32
    %197 = vector.broadcast %cst_115 : f32 to vector<8x1xf32>
    %198 = arith.divf %196, %197 : vector<8x1xf32>
    %199 = vector.broadcast %191 : vector<8x1xf32> to vector<8x32xf32>
    %200 = arith.subf %183, %199 : vector<8x32xf32>
    %cst_116 = arith.constant 9.99999974E-6 : f32
    %201 = vector.broadcast %cst_116 : f32 to vector<8x1xf32>
    %202 = arith.addf %198, %201 : vector<8x1xf32>
    %203 = math.rsqrt %202 : vector<8x1xf32>
    %204 = vector.broadcast %203 : vector<8x1xf32> to vector<8x32xf32>
    %205 = arith.mulf %200, %204 : vector<8x32xf32>
    %206 = vector.broadcast %185 : vector<1x32xf32> to vector<8x32xf32>
    %207 = arith.mulf %205, %206 : vector<8x32xf32>
    %208 = vector.broadcast %187 : vector<1x32xf32> to vector<8x32xf32>
    %209 = arith.addf %207, %208 : vector<8x32xf32>
    %210 = arith.truncf %209 : vector<8x32xf32> to vector<8x32xbf16>
    %c1_117 = arith.constant 1 : index
    %c0_118 = arith.constant 0 : index
    %c0_119 = arith.constant 0 : index
    %211 = vector.load %arg11[%c1_117, %c0_118, %c0_119] : memref<2x32x64xbf16, #tpu.memory_space<vmem>>, vector<1x32x64xbf16>
    %212 = vector.shape_cast %211 : vector<1x32x64xbf16> to vector<32x64xbf16>
    %cst_120 = arith.constant dense<0.000000e+00> : vector<8x64xf32>
    %213 = tpu.matmul %210, %212, %cst_120 {dimension_numbers = #tpu.dot_dimension_numbers<[1], [0], [0], [1], [0, 0, 1, 1], [], []>} : vector<8x32xbf16>, vector<32x64xbf16>, vector<8x64xf32> -> vector<8x64xf32>
    %c1_121 = arith.constant 1 : index
    %c0_122 = arith.constant 0 : index
    %c0_123 = arith.constant 0 : index
    %214 = vector.load %arg12[%c1_121, %c0_122, %c0_123] : memref<2x1x64xf32, #tpu.memory_space<vmem>>, vector<1x1x64xf32>
    %215 = vector.shape_cast %214 : vector<1x1x64xf32> to vector<1x64xf32>
    %216 = vector.broadcast %215 : vector<1x64xf32> to vector<8x64xf32>
    %217 = arith.addf %213, %216 : vector<8x64xf32>
    %cst_124 = arith.constant 0.000000e+00 : f32
    %218 = vector.broadcast %cst_124 : f32 to vector<8x64xf32>
    %219 = arith.maximumf %217, %218 : vector<8x64xf32>
    %220 = arith.truncf %219 : vector<8x64xf32> to vector<8x64xbf16>
    %c1_125 = arith.constant 1 : index
    %c0_126 = arith.constant 0 : index
    %c0_127 = arith.constant 0 : index
    %221 = vector.load %arg13[%c1_125, %c0_126, %c0_127] : memref<2x64x32xbf16, #tpu.memory_space<vmem>>, vector<1x64x32xbf16>
    %222 = vector.shape_cast %221 : vector<1x64x32xbf16> to vector<64x32xbf16>
    %cst_128 = arith.constant dense<0.000000e+00> : vector<8x32xf32>
    %223 = tpu.matmul %220, %222, %cst_128 {dimension_numbers = #tpu.dot_dimension_numbers<[1], [0], [0], [1], [0, 0, 1, 1], [], []>} : vector<8x64xbf16>, vector<64x32xbf16>, vector<8x32xf32> -> vector<8x32xf32>
    %c1_129 = arith.constant 1 : index
    %c0_130 = arith.constant 0 : index
    %c0_131 = arith.constant 0 : index
    %224 = vector.load %arg14[%c1_129, %c0_130, %c0_131] : memref<2x1x32xf32, #tpu.memory_space<vmem>>, vector<1x1x32xf32>
    %225 = vector.shape_cast %224 : vector<1x1x32xf32> to vector<1x32xf32>
    %226 = vector.broadcast %225 : vector<1x32xf32> to vector<8x32xf32>
    %227 = arith.addf %223, %226 : vector<8x32xf32>
    %228 = arith.addf %209, %227 : vector<8x32xf32>
    %c1_132 = arith.constant 1 : index
    %c0_133 = arith.constant 0 : index
    %c0_134 = arith.constant 0 : index
    %229 = vector.load %arg17[%c1_132, %c0_133, %c0_134] : memref<2x1x32xf32, #tpu.memory_space<vmem>>, vector<1x1x32xf32>
    %230 = vector.shape_cast %229 : vector<1x1x32xf32> to vector<1x32xf32>
    %c1_135 = arith.constant 1 : index
    %c0_136 = arith.constant 0 : index
    %c0_137 = arith.constant 0 : index
    %231 = vector.load %arg18[%c1_135, %c0_136, %c0_137] : memref<2x1x32xf32, #tpu.memory_space<vmem>>, vector<1x1x32xf32>
    %232 = vector.shape_cast %231 : vector<1x1x32xf32> to vector<1x32xf32>
    %cst_138 = arith.constant dense<0.000000e+00> : vector<8xf32>
    %233 = vector.multi_reduction <add>, %228, %cst_138 [1] : vector<8x32xf32> to vector<8xf32>
    %234 = vector.shape_cast %233 : vector<8xf32> to vector<8x1xf32>
    %cst_139 = arith.constant 3.200000e+01 : f32
    %235 = vector.broadcast %cst_139 : f32 to vector<8x1xf32>
    %236 = arith.divf %234, %235 : vector<8x1xf32>
    %237 = vector.broadcast %236 : vector<8x1xf32> to vector<8x32xf32>
    %238 = arith.subf %228, %237 : vector<8x32xf32>
    %239 = arith.mulf %238, %238 : vector<8x32xf32>
    %cst_140 = arith.constant dense<0.000000e+00> : vector<8xf32>
    %240 = vector.multi_reduction <add>, %239, %cst_140 [1] : vector<8x32xf32> to vector<8xf32>
    %241 = vector.shape_cast %240 : vector<8xf32> to vector<8x1xf32>
    %cst_141 = arith.constant 3.200000e+01 : f32
    %242 = vector.broadcast %cst_141 : f32 to vector<8x1xf32>
    %243 = arith.divf %241, %242 : vector<8x1xf32>
    %244 = vector.broadcast %236 : vector<8x1xf32> to vector<8x32xf32>
    %245 = arith.subf %228, %244 : vector<8x32xf32>
    %cst_142 = arith.constant 9.99999974E-6 : f32
    %246 = vector.broadcast %cst_142 : f32 to vector<8x1xf32>
    %247 = arith.addf %243, %246 : vector<8x1xf32>
    %248 = math.rsqrt %247 : vector<8x1xf32>
    %249 = vector.broadcast %248 : vector<8x1xf32> to vector<8x32xf32>
    %250 = arith.mulf %245, %249 : vector<8x32xf32>
    %251 = vector.broadcast %230 : vector<1x32xf32> to vector<8x32xf32>
    %252 = arith.mulf %250, %251 : vector<8x32xf32>
    %253 = vector.broadcast %232 : vector<1x32xf32> to vector<8x32xf32>
    %254 = arith.addf %252, %253 : vector<8x32xf32>
    %c0_143 = arith.constant 0 : index
    %c0_144 = arith.constant 0 : index
    %255 = vector.load %arg19[%c0_143, %c0_144] : memref<1x32xf32, #tpu.memory_space<vmem>>, vector<1x32xf32>
    %c0_145 = arith.constant 0 : index
    %c0_146 = arith.constant 0 : index
    %256 = vector.load %arg20[%c0_145, %c0_146] : memref<1x32xf32, #tpu.memory_space<vmem>>, vector<1x32xf32>
    %cst_147 = arith.constant dense<0.000000e+00> : vector<8xf32>
    %257 = vector.multi_reduction <add>, %254, %cst_147 [1] : vector<8x32xf32> to vector<8xf32>
    %258 = vector.shape_cast %257 : vector<8xf32> to vector<8x1xf32>
    %cst_148 = arith.constant 3.200000e+01 : f32
    %259 = vector.broadcast %cst_148 : f32 to vector<8x1xf32>
    %260 = arith.divf %258, %259 : vector<8x1xf32>
    %261 = vector.broadcast %260 : vector<8x1xf32> to vector<8x32xf32>
    %262 = arith.subf %254, %261 : vector<8x32xf32>
    %263 = arith.mulf %262, %262 : vector<8x32xf32>
    %cst_149 = arith.constant dense<0.000000e+00> : vector<8xf32>
    %264 = vector.multi_reduction <add>, %263, %cst_149 [1] : vector<8x32xf32> to vector<8xf32>
    %265 = vector.shape_cast %264 : vector<8xf32> to vector<8x1xf32>
    %cst_150 = arith.constant 3.200000e+01 : f32
    %266 = vector.broadcast %cst_150 : f32 to vector<8x1xf32>
    %267 = arith.divf %265, %266 : vector<8x1xf32>
    %268 = vector.broadcast %260 : vector<8x1xf32> to vector<8x32xf32>
    %269 = arith.subf %254, %268 : vector<8x32xf32>
    %cst_151 = arith.constant 9.99999974E-6 : f32
    %270 = vector.broadcast %cst_151 : f32 to vector<8x1xf32>
    %271 = arith.addf %267, %270 : vector<8x1xf32>
    %272 = math.rsqrt %271 : vector<8x1xf32>
    %273 = vector.broadcast %272 : vector<8x1xf32> to vector<8x32xf32>
    %274 = arith.mulf %269, %273 : vector<8x32xf32>
    %275 = vector.broadcast %255 : vector<1x32xf32> to vector<8x32xf32>
    %276 = arith.mulf %274, %275 : vector<8x32xf32>
    %277 = vector.broadcast %256 : vector<1x32xf32> to vector<8x32xf32>
    %278 = arith.addf %276, %277 : vector<8x32xf32>
    %279 = arith.truncf %278 : vector<8x32xf32> to vector<8x32xbf16>
    %c0_152 = arith.constant 0 : index
    %c0_153 = arith.constant 0 : index
    %280 = vector.load %arg21[%c0_152, %c0_153] : memref<32x128xbf16, #tpu.memory_space<vmem>>, vector<32x128xbf16>
    %cst_154 = arith.constant dense<0.000000e+00> : vector<8x128xf32>
    %281 = tpu.matmul %279, %280, %cst_154 {dimension_numbers = #tpu.dot_dimension_numbers<[1], [0], [0], [1], [0, 0, 1, 1], [], []>} : vector<8x32xbf16>, vector<32x128xbf16>, vector<8x128xf32> -> vector<8x128xf32>
    %c0_155 = arith.constant 0 : index
    %c0_156 = arith.constant 0 : index
    %282 = vector.load %arg22[%c0_155, %c0_156] : memref<1x128xf32, #tpu.memory_space<vmem>>, vector<1x128xf32>
    %283 = vector.broadcast %282 : vector<1x128xf32> to vector<8x128xf32>
    %284 = arith.addf %281, %283 : vector<8x128xf32>
    %c0_157 = arith.constant 0 : index
    %c0_158 = arith.constant 0 : index
    %c0_159 = arith.constant 0 : index
    %285 = vector.load %arg23[%c0_157, %c0_158, %c0_159] : memref<1x8x128xf32, #tpu.memory_space<vmem>>, vector<1x8x128xf32>
    %286 = vector.shape_cast %285 : vector<1x8x128xf32> to vector<8x128xf32>
    %287 = vector.shape_cast %284 : vector<8x128xf32> to vector<1x8x128xf32>
    tpu.vector_store %arg23[%c0_157, %c0_158, %c0_159], %287 {strides = array<i32>} : memref<1x8x128xf32, #tpu.memory_space<vmem>>, vector<1x8x128xf32>,
    return
  }
  func.func @transform_0(%arg0: i32) -> (i32, i32, i32) {
    %c0_i32 = arith.constant 0 : i32
    %c0_i32_0 = arith.constant 0 : i32
    %c0_i32_1 = arith.constant 0 : i32
    return %arg0, %c0_i32, %c0_i32_0 : i32, i32, i32
  }
  func.func @transform_1(%arg0: i32) -> (i32, i32, i32) {
    %c0_i32 = arith.constant 0 : i32
    %c0_i32_0 = arith.constant 0 : i32
    %c0_i32_1 = arith.constant 0 : i32
    return %arg0, %c0_i32, %c0_i32_0 : i32, i32, i32
  }
  func.func @transform_2(%arg0: i32) -> (i32, i32, i32) {
    %c0_i32 = arith.constant 0 : i32
    %c0_i32_0 = arith.constant 0 : i32
    %c0_i32_1 = arith.constant 0 : i32
    %c0_i32_2 = arith.constant 0 : i32
    return %c0_i32, %c0_i32_0, %c0_i32_1 : i32, i32, i32
  }
  func.func @transform_3(%arg0: i32) -> (i32, i32, i32) {
    %c0_i32 = arith.constant 0 : i32
    %c0_i32_0 = arith.constant 0 : i32
    %c0_i32_1 = arith.constant 0 : i32
    %c0_i32_2 = arith.constant 0 : i32
    return %c0_i32, %c0_i32_0, %c0_i32_1 : i32, i32, i32
  }
  func.func @transform_4(%arg0: i32) -> (i32, i32, i32) {
    %c0_i32 = arith.constant 0 : i32
    %c0_i32_0 = arith.constant 0 : i32
    %c0_i32_1 = arith.constant 0 : i32
    %c0_i32_2 = arith.constant 0 : i32
    return %c0_i32, %c0_i32_0, %c0_i32_1 : i32, i32, i32
  }
  func.func @transform_5(%arg0: i32) -> (i32, i32, i32) {
    %c0_i32 = arith.constant 0 : i32
    %c0_i32_0 = arith.constant 0 : i32
    %c0_i32_1 = arith.constant 0 : i32
    %c0_i32_2 = arith.constant 0 : i32
    return %c0_i32, %c0_i32_0, %c0_i32_1 : i32, i32, i32
  }
  func.func @transform_6(%arg0: i32) -> (i32, i32, i32) {
    %c0_i32 = arith.constant 0 : i32
    %c0_i32_0 = arith.constant 0 : i32
    %c0_i32_1 = arith.constant 0 : i32
    %c0_i32_2 = arith.constant 0 : i32
    return %c0_i32, %c0_i32_0, %c0_i32_1 : i32, i32, i32
  }
  func.func @transform_7(%arg0: i32) -> (i32, i32, i32) {
    %c0_i32 = arith.constant 0 : i32
    %c0_i32_0 = arith.constant 0 : i32
    %c0_i32_1 = arith.constant 0 : i32
    %c0_i32_2 = arith.constant 0 : i32
    return %c0_i32, %c0_i32_0, %c0_i32_1 : i32, i32, i32
  }
  func.func @transform_8(%arg0: i32) -> (i32, i32, i32) {
    %c0_i32 = arith.constant 0 : i32
    %c0_i32_0 = arith.constant 0 : i32
    %c0_i32_1 = arith.constant 0 : i32
    %c0_i32_2 = arith.constant 0 : i32
    return %c0_i32, %c0_i32_0, %c0_i32_1 : i32, i32, i32
  }
  func.func @transform_9(%arg0: i32) -> (i32, i32, i32) {
    %c0_i32 = arith.constant 0 : i32
    %c0_i32_0 = arith.constant 0 : i32
    %c0_i32_1 = arith.constant 0 : i32
    %c0_i32_2 = arith.constant 0 : i32
    return %c0_i32, %c0_i32_0, %c0_i32_1 : i32, i32, i32
  }
  func.func @transform_10(%arg0: i32) -> (i32, i32, i32) {
    %c0_i32 = arith.constant 0 : i32
    %c0_i32_0 = arith.constant 0 : i32
    %c0_i32_1 = arith.constant 0 : i32
    %c0_i32_2 = arith.constant 0 : i32
    return %c0_i32, %c0_i32_0, %c0_i32_1 : i32, i32, i32
  }
  func.func @transform_11(%arg0: i32) -> (i32, i32, i32) {
    %c0_i32 = arith.constant 0 : i32
    %c0_i32_0 = arith.constant 0 : i32
    %c0_i32_1 = arith.constant 0 : i32
    %c0_i32_2 = arith.constant 0 : i32
    return %c0_i32, %c0_i32_0, %c0_i32_1 : i32, i32, i32
  }
  func.func @transform_12(%arg0: i32) -> (i32, i32, i32) {
    %c0_i32 = arith.constant 0 : i32
    %c0_i32_0 = arith.constant 0 : i32
    %c0_i32_1 = arith.constant 0 : i32
    %c0_i32_2 = arith.constant 0 : i32
    return %c0_i32, %c0_i32_0, %c0_i32_1 : i32, i32, i32
  }
  func.func @transform_13(%arg0: i32) -> (i32, i32, i32) {
    %c0_i32 = arith.constant 0 : i32
    %c0_i32_0 = arith.constant 0 : i32
    %c0_i32_1 = arith.constant 0 : i32
    %c0_i32_2 = arith.constant 0 : i32
    return %c0_i32, %c0_i32_0, %c0_i32_1 : i32, i32, i32
  }
  func.func @transform_14(%arg0: i32) -> (i32, i32, i32) {
    %c0_i32 = arith.constant 0 : i32
    %c0_i32_0 = arith.constant 0 : i32
    %c0_i32_1 = arith.constant 0 : i32
    %c0_i32_2 = arith.constant 0 : i32
    return %c0_i32, %c0_i32_0, %c0_i32_1 : i32, i32, i32
  }
  func.func @transform_15(%arg0: i32) -> (i32, i32, i32) {
    %c0_i32 = arith.constant 0 : i32
    %c0_i32_0 = arith.constant 0 : i32
    %c0_i32_1 = arith.constant 0 : i32
    %c0_i32_2 = arith.constant 0 : i32
    return %c0_i32, %c0_i32_0, %c0_i32_1 : i32, i32, i32
  }
  func.func @transform_16(%arg0: i32) -> (i32, i32, i32) {
    %c0_i32 = arith.constant 0 : i32
    %c0_i32_0 = arith.constant 0 : i32
    %c0_i32_1 = arith.constant 0 : i32
    %c0_i32_2 = arith.constant 0 : i32
    return %c0_i32, %c0_i32_0, %c0_i32_1 : i32, i32, i32
  }
  func.func @transform_17(%arg0: i32) -> (i32, i32, i32) {
    %c0_i32 = arith.constant 0 : i32
    %c0_i32_0 = arith.constant 0 : i32
    %c0_i32_1 = arith.constant 0 : i32
    %c0_i32_2 = arith.constant 0 : i32
    return %c0_i32, %c0_i32_0, %c0_i32_1 : i32, i32, i32
  }
  func.func @transform_18(%arg0: i32) -> (i32, i32) {
    %c0_i32 = arith.constant 0 : i32
    %c0_i32_0 = arith.constant 0 : i32
    %c0_i32_1 = arith.constant 0 : i32
    return %c0_i32, %c0_i32_0 : i32, i32
  }
  func.func @transform_19(%arg0: i32) -> (i32, i32) {
    %c0_i32 = arith.constant 0 : i32
    %c0_i32_0 = arith.constant 0 : i32
    %c0_i32_1 = arith.constant 0 : i32
    return %c0_i32, %c0_i32_0 : i32, i32
  }
  func.func @transform_20(%arg0: i32) -> (i32, i32) {
    %c0_i32 = arith.constant 0 : i32
    %c0_i32_0 = arith.constant 0 : i32
    %c0_i32_1 = arith.constant 0 : i32
    return %c0_i32, %c0_i32_0 : i32, i32
  }
  func.func @transform_21(%arg0: i32) -> (i32, i32) {
    %c0_i32 = arith.constant 0 : i32
    %c0_i32_0 = arith.constant 0 : i32
    %c0_i32_1 = arith.constant 0 : i32
    return %c0_i32, %c0_i32_0 : i32, i32
  }
  func.func @transform_22(%arg0: i32) -> (i32, i32, i32) {
    %c0_i32 = arith.constant 0 : i32
    %c0_i32_0 = arith.constant 0 : i32
    %c0_i32_1 = arith.constant 0 : i32
    return %arg0, %c0_i32, %c0_i32_0 : i32, i32, i32
  }
}

</mosaic_0001>

<bundles_post_ra>
// kernel: tpu_custom_call.1
= control target key start
LH: loop header
LB: loop body
LE: loop exit
PB: predicated region body
PF: predicated region fallthrough
CT: control target
= control target key end

     0   :  { %s5731_s0 = inlined_call_operand.hbm [shape: f32[2,8,32], index: 0, kind: input, shape index: {}]   ;;  %s5732_s1 = inlined_call_operand.vmem [shape: f32[2,16,32], index: 1, kind: input, shape index: {}]   ;;  %s5733_s2 = inlined_call_operand.vmem [shape: bf16[2,32,32], index: 2, kind: input, shape index: {}]   ;;  %s5734_s3 = inlined_call_operand.hbm [shape: f32[2,1,32], index: 3, kind: input, shape index: {}]   ;;  %s5735_s4 = inlined_call_operand.vmem [shape: bf16[2,32,32], index: 4, kind: input, shape index: {}]   ;;  %s5736_s5 = inlined_call_operand.hbm [shape: f32[2,1,32], index: 5, kind: input, shape index: {}]   ;;  %s5737_s6 = inlined_call_operand.hbm [shape: bf16[2,32,32], index: 6, kind: input, shape index: {}]   ;;  %s5738_s7 = inlined_call_operand.hbm [shape: f32[2,1,32], index: 7, kind: input, shape index: {}]   ;;  %s5739_s8 = inlined_call_operand.hbm [shape: bf16[2,32,32], index: 8, kind: input, shape index: {}]   ;;  %s5740_s9 = inlined_call_operand.hbm [shape: f32[2,1,32], index: 9, kind: input, shape index: {}]   ;;  %s5741_s10 = inlined_call_operand.hbm [shape: bf16[2,32,64], index: 10, kind: input, shape index: {}]   ;;  %s5742_s11 = inlined_call_operand.hbm [shape: f32[2,1,64], index: 11, kind: input, shape index: {}]   ;;  %s5743_s12 = inlined_call_operand.vmem [shape: bf16[2,64,32], index: 12, kind: input, shape index: {}]   ;;  %s5744_s13 = inlined_call_operand.hbm [shape: f32[2,1,32], index: 13, kind: input, shape index: {}]   ;;  %s5745_s14 = inlined_call_operand.vmem [shape: f32[2,1,32], index: 14, kind: input, shape index: {}]   ;;  %s5746_s15 = inlined_call_operand.vmem [shape: f32[2,1,32], index: 15, kind: input, shape index: {}]   ;;  %s5747_s16 = inlined_call_operand.vmem [shape: f32[2,1,32], index: 16, kind: input, shape index: {}]   ;;  %s5748_s17 = inlined_call_operand.vmem [shape: f32[2,1,32], index: 17, kind: input, shape index: {}]   ;;  %s5749_s18 = inlined_call_operand.vmem [shape: f32[1,32], index: 18, kind: input, shape index: {}]   ;;  %s5750_s19 = inlined_call_operand.vmem [shape: f32[1,32], index: 19, kind: input, shape index: {}]   ;;  %s5751_s20 = inlined_call_operand.vmem [shape: bf16[32,128], index: 20, kind: input, shape index: {}]   ;;  %s5752_s21 = inlined_call_operand.vmem [shape: f32[1,128], index: 21, kind: input, shape index: {}]   ;;  %s5753_s22 = inlined_call_operand.hbm [shape: f32[2,8,128], index: 22, kind: output, shape index: {}]  }
   0x1   :  { %5780 = sst [smem:[#allocation27_spill]] %s5731_s0 }
   0x2   :  { %5781 = sst [smem:[#allocation28_spill]] %s5732_s1 }
   0x3   :  { %5782 = sst [smem:[#allocation29_spill]] %s5733_s2 }
   0x4   :  { %5783 = sst [smem:[#allocation30_spill]] %s5734_s3 }
   0x5   :  { %5784 = sst [smem:[#allocation31_spill]] %s5735_s4 }
   0x6   :  { %5785 = sst [smem:[#allocation32_spill]] %s5736_s5 }
   0x7   :  { %5786 = sst [smem:[#allocation33_spill]] %s5737_s6 }
   0x8   :  { %5787 = sst [smem:[#allocation34_spill]] %s5738_s7 }
   0x9   :  { %5788 = sst [smem:[#allocation35_spill]] %s5739_s8 }
   0xa   :  { %5789 = sst [smem:[#allocation36_spill]] %s5740_s9 }
   0xb   :  { %5790 = sst [smem:[#allocation37_spill]] %s5741_s10 }
   0xc   :  { %5791 = sst [smem:[#allocation38_spill]] %s5742_s11 }
   0xd   :  { %5792 = sst [smem:[#allocation39_spill]] %s5745_s14 }
   0xe   :  { %5793 = sst [smem:[#allocation40_spill]] %s5746_s15 }
   0xf   :  { %5794 = sst [smem:[#allocation41_spill]] %s5747_s16 }
  0x10   :  { %5795 = sst [smem:[#allocation42_spill]] %s5748_s17 }
  0x11   :  { %5796 = sst [smem:[#allocation43_spill]] %s5749_s18 }
  0x12   :  { %5797 = sst [smem:[#allocation44_spill]] %s5750_s19 }
  0x13   :  { %5798 = sst [smem:[#allocation45_spill]] %s5751_s20 }
  0x14   :  { %5799 = sst [smem:[#allocation46_spill]] %s5752_s21 }
  0x15   :  { %5800 = sst [smem:[#allocation47_spill]] %s5753_s22 }
  0x16   :  { %27 = vsyncpa [#allocation3], 0 }
  0x17   :  { %29 = vsyncpa [#allocation3 + $0x1], 0 }
  0x18   :  { %30 = vsyncpa [#allocation6], 0 }
  0x19   :  { %31 = vsyncpa [#allocation9], 0 }
  0x1a   :  { %32 = vsyncpa [#allocation12], 0 }
  0x1b   :  { %33 = vsyncpa [#allocation15], 0 }
  0x1c   :  { %34 = vsyncpa [#allocation18], 0 }
  0x1d   :  { %35 = vsyncpa [#allocation4], 0 }
  0x1e   :  { %37 = vsyncpa [#allocation4 + $0x1], 0  ;;  %s4976_s3 = smov 0   ;;  %s4978_s28 = smov 0  }
  0x1f   :  { %s4980_s29 = smov 0   ;;  %s4982_s30 = smov 0  }
  0x20 LB: > { %s4836_s4 = smov [#allocation5]   ;;  %s4997_s23 = sadd.s32 4294967295, %s4834_s30   ;;  %s4834_s30 = sphi %s4982_s30, %s5853_s30   ;;  %s4830_s29 = sphi %s4980_s29, %s5852_s29   ;;  %s4826_s28 = sphi %s4978_s28, %s5851_s28   ;;  %s4822_s3 = sphi %s4976_s3, %s5850_s3  }
  0x21   : > { %s561_s0 = sshll.u32 %s4836_s4, 4  ;;  %p3821_p0 = scmp.ge.s32.totalorder %s4834_s30, 1  ;;  %s5002_s0 = int_to_ptr.vmem [resolvable:$true] %s561_s0 }
  0x22   : > { %p5768_p1 = scmp.eq.s32.totalorder %s4997_s23, 0  ;;  %p546_p2 = scmp.lt.s32.totalorder %s4834_s30, 3 }
  0x23   : > { %s4837_s5 = smov [#allocation8]   ;;  %s4838_s25 = smov [#allocation11]  }
  0x24   : > { %p5004_p3 = pnand %p3821_p0, %p546_p2  ;;  %s590_s24 = sshll.u32 %s4837_s5, 4  ;;  %s5017_s24 = int_to_ptr.vmem [resolvable:$true] %s590_s24 }
  0x25   : > { %s5019_s26 = sshll.u32 %s4838_s25, 4  ;;  %s5803_s4 = sld [smem:[#allocation30_spill]]  ;;  %s617_s26 = int_to_ptr.vmem [resolvable:$true] %s5019_s26 }
  0x26   : > { %s5801_s1 = scalar_select %p5004_p3, 1, 0 }
  0x27   : > { %p4282_p5 = pneg %p5004_p3 }
  0x29   : > { %p5013_p6 = pnand %p4282_p5, %p5768_p1 }
  0x2b   : > { %s4466_s22 = scalar_lea.hbm %s5803_s4, 32  ;;  %p5029_p8 = pneg %p5013_p6 }
  0x2c   : > { %p4467_p7 = scmp.ne.s32.totalorder %s5803_s4, %s4466_s22  ;;  %p4473_p11 = scmp.lt.u32.totalorder %s4466_s22, %s5803_s4 }
  0x2e   : > { %p4469_p9 = pnand %p5029_p8, %p4467_p7 }
  0x30   : > { %p4470_p10 = pneg %p4469_p9 }
  0x32   : > { %p4475_p12 = pnand %p4473_p11, %p4470_p10 }
  0x34   : > { %4478 = shalt.err (!%p4475_p12)
}
  0x35   : > { %s4479_s19 = scalar_lea.vmem %s5002_s0, 32  ;;  %p4487_p5 = scmp.lt.s32.totalorder %s5002_s0, %s5002_s0 }
  0x36   : > { %p4480_p13 = scmp.ne.s32.totalorder %s5002_s0, %s4479_s19  ;;  %p4488_p4 = scmp.lt.s32.totalorder %s4479_s19, %s4479_s19 }
  0x38   : > { %p4482_p0 = pnand %p4480_p13, %p5029_p8  ;;  %p4489_p7 = por %p4488_p4, %p4487_p5 }
  0x3a   : > { %p4483_p2 = pneg %p4482_p0 }
  0x3c   : > { %p4490_p9 = pnand %p4489_p7, %p4483_p2 }
  0x3e   : > { %4493 = shalt.err (!%p4490_p9)
}
  0x3f   : > { %s5766_s21 = smov 16   ;;  %s5770_s18 = smov 1  }
  0x40   : > { %4285 = dma.hbm_to_vmem [thread:$0]  (!%p5013_p6), %s5803_s4, 32, %s5002_s0, [#allocation6], %s5766_s21, %s5766_s21, %s5770_s18  }
  0x41   : > { %s5805_s20 = sld [smem:[#allocation33_spill]] }
  0x47   : > { %s4494_s19 = scalar_lea.hbm %s5805_s20, 512 }
  0x48   : > { %p4495_p4 = scmp.ne.s32.totalorder %s5805_s20, %s4494_s19  ;;  %p4501_p12 = scmp.lt.u32.totalorder %s4494_s19, %s5805_s20 }
  0x4a   : > { %p4497_p10 = pnand %p4495_p4, %p5029_p8 }
  0x4c   : > { %p4498_p11 = pneg %p4497_p10 }
  0x4e   : > { %p4503_p13 = pnand %p4501_p12, %p4498_p11 }
  0x50   : > { %4506 = shalt.err (!%p4503_p13)
}
  0x51   : > { %s4507_s0 = scalar_lea.vmem %s5017_s24, 512  ;;  %p4515_p7 = scmp.lt.s32.totalorder %s5017_s24, %s5017_s24 }
  0x52   : > { %p4508_p0 = scmp.ne.s32.totalorder %s5017_s24, %s4507_s0  ;;  %p4516_p9 = scmp.lt.s32.totalorder %s4507_s0, %s4507_s0 }
  0x54   : > { %p4510_p2 = pnand %p4508_p0, %p5029_p8  ;;  %p4517_p4 = por %p4516_p9, %p4515_p7 }
  0x56   : > { %p4511_p5 = pneg %p4510_p2 }
  0x58   : > { %p4518_p10 = pnand %p4517_p4, %p4511_p5 }
  0x5a   : > { %4521 = shalt.err (!%p4518_p10)
}
  0x5b   : > { %s4841_s16 = smov 64   ;;  %s4842_s14 = smov 4  }
  0x5c   : > { %4291 = dma.hbm_to_vmem [thread:$0]  (!%p5013_p6), %s5805_s20, 512, %s5017_s24, [#allocation9], %s4841_s16, %s4841_s16, %s4842_s14  }
  0x5d   : > { %s5806_s8 = sld [smem:[#allocation35_spill]] }
  0x63   : > { %s4522_s27 = scalar_lea.hbm %s5806_s8, 512 }
  0x64   : > { %p4523_p11 = scmp.ne.s32.totalorder %s5806_s8, %s4522_s27  ;;  %p4529_p0 = scmp.lt.u32.totalorder %s4522_s27, %s5806_s8 }
  0x66   : > { %p4525_p12 = pnand %p4523_p11, %p5029_p8 }
  0x68   : > { %p4526_p13 = pneg %p4525_p12 }
  0x6a   : > { %p4531_p2 = pnand %p4529_p0, %p4526_p13 }
  0x6c   : > { %4534 = shalt.err (!%p4531_p2)
}
  0x6d   : > { %s4535_s15 = scalar_lea.vmem %s617_s26, 512  ;;  %p4543_p4 = scmp.lt.s32.totalorder %s617_s26, %s617_s26 }
  0x6e   : > { %p4536_p5 = scmp.ne.s32.totalorder %s617_s26, %s4535_s15  ;;  %p4544_p10 = scmp.lt.s32.totalorder %s4535_s15, %s4535_s15 }
  0x70   : > { %p4538_p7 = pnand %p4536_p5, %p5029_p8  ;;  %p4545_p1 = por %p4544_p10, %p4543_p4 }
  0x72   : > { %p4539_p9 = pneg %p4538_p7 }
  0x74   : > { %p4546_p3 = pnand %p4545_p1, %p4539_p9 }
  0x76   : > { %4549 = shalt.err (!%p4546_p3)
}
  0x77   : > { %4297 = dma.hbm_to_vmem [thread:$0]  (!%p5013_p6), %s5806_s8, 512, %s617_s26, [#allocation12], %s4841_s16, %s4841_s16, %s4842_s14  }
  0x78   : > { %s4843_s17 = smov [#allocation14]   ;;  %s4844_s2 = smov [#allocation7]  }
  0x79   : > { %s642_s22 = sshll.u32 %s4843_s17, 4  ;;  %s577_s27 = sshll.u32 %s4844_s2, 4  ;;  %s643_s22 = int_to_ptr.vmem [resolvable:$true] %s642_s22  ;;  %s578_s27 = int_to_ptr.vmem [resolvable:$true] %s577_s27 }
  0x7a   : > { %s5807_s10 = sld [smem:[#allocation37_spill]] }
  0x80   : > { %s4550_s0 = scalar_lea.hbm %s5807_s10, 512 }
  0x81   : > { %p4551_p1 = scmp.ne.s32.totalorder %s5807_s10, %s4550_s0  ;;  %p4557_p12 = scmp.lt.u32.totalorder %s4550_s0, %s5807_s10 }
  0x83   : > { %p4553_p3 = pnand %p4551_p1, %p5029_p8 }
  0x85   : > { %p4554_p11 = pneg %p4553_p3 }
  0x87   : > { %p4559_p13 = pnand %p4557_p12, %p4554_p11 }
  0x89   : > { %4562 = shalt.err (!%p4559_p13)
}
  0x8a   : > { %s4563_s26 = scalar_lea.vmem %s643_s22, 512  ;;  %p4571_p7 = scmp.lt.s32.totalorder %s643_s22, %s643_s22 }
  0x8b   : > { %p4564_p0 = scmp.ne.s32.totalorder %s643_s22, %s4563_s26  ;;  %p4572_p9 = scmp.lt.s32.totalorder %s4563_s26, %s4563_s26 }
  0x8d   : > { %p4566_p2 = pnand %p4564_p0, %p5029_p8  ;;  %p4573_p4 = por %p4572_p9, %p4571_p7 }
  0x8f   : > { %p4567_p5 = pneg %p4566_p2 }
  0x91   : > { %p4574_p10 = pnand %p4573_p4, %p4567_p5 }
  0x93   : > { %4577 = shalt.err (!%p4574_p10)
}
  0x94   : > { %4303 = dma.hbm_to_vmem [thread:$0]  (!%p5013_p6), %s5807_s10, 512, %s643_s22, [#allocation15], %s4841_s16, %s4841_s16, %s4842_s14  }
  0x95   : > { %s5808_s2 = sld [smem:[#allocation32_spill]] }
  0x9b   : > { %s4578_s25 = scalar_lea.hbm %s5808_s2, 32 }
  0x9c   : > { %p4579_p1 = scmp.ne.s32.totalorder %s5808_s2, %s4578_s25  ;;  %p4585_p12 = scmp.lt.u32.totalorder %s4578_s25, %s5808_s2 }
  0x9e   : > { %p4581_p3 = pnand %p4579_p1, %p5029_p8 }
  0xa0   : > { %p4582_p11 = pneg %p4581_p3 }
  0xa2   : > { %p4587_p13 = pnand %p4585_p12, %p4582_p11 }
  0xa4   : > { %4590 = shalt.err (!%p4587_p13)
}
  0xa5   : > { %s4591_s26 = scalar_lea.vmem %s578_s27, 32  ;;  %p4599_p7 = scmp.lt.s32.totalorder %s578_s27, %s578_s27 }
  0xa6   : > { %p4592_p0 = scmp.ne.s32.totalorder %s578_s27, %s4591_s26  ;;  %p4600_p9 = scmp.lt.s32.totalorder %s4591_s26, %s4591_s26 }
  0xa8   : > { %p4594_p2 = pnand %p4592_p0, %p5029_p8  ;;  %p4601_p4 = por %p4600_p9, %p4599_p7 }
  0xaa   : > { %p4595_p5 = pneg %p4594_p2 }
  0xac   : > { %p4602_p10 = pnand %p4601_p4, %p4595_p5 }
  0xae   : > { %4605 = shalt.err (!%p4602_p10)
}
  0xaf   : > { %s5809_s16 = smov 1   ;;  %s5810_s14 = smov 16  }
  0xb0   : > { %4288 = dma.hbm_to_vmem [thread:$0]  (!%p5013_p6), %s5808_s2, 32, %s578_s27, [#allocation6], %s5810_s14, %s5810_s14, %s5809_s16  }
  0xb1   : > { %s4845_s18 = smov [#allocation10]   ;;  %s4846_s17 = smov [#allocation13]  }
  0xb2   : > { %s603_s21 = sshll.u32 %s4845_s18, 4  ;;  %s629_s25 = sshll.u32 %s4846_s17, 4  ;;  %s604_s21 = int_to_ptr.vmem [resolvable:$true] %s603_s21  ;;  %s630_s25 = int_to_ptr.vmem [resolvable:$true] %s629_s25 }
  0xb3   : > { %s5811_s7 = sld [smem:[#allocation34_spill]] }
  0xb9   : > { %s4606_s15 = scalar_lea.hbm %s5811_s7, 32 }
  0xba   : > { %p4607_p1 = scmp.ne.s32.totalorder %s5811_s7, %s4606_s15  ;;  %p4613_p12 = scmp.lt.u32.totalorder %s4606_s15, %s5811_s7 }
  0xbc   : > { %p4609_p3 = pnand %p4607_p1, %p5029_p8 }
  0xbe   : > { %p4610_p11 = pneg %p4609_p3 }
  0xc0   : > { %p4615_p13 = pnand %p4613_p12, %p4610_p11 }
  0xc2   : > { %4618 = shalt.err (!%p4615_p13)
}
  0xc3   : > { %s4619_s27 = scalar_lea.vmem %s604_s21, 32  ;;  %p4627_p7 = scmp.lt.s32.totalorder %s604_s21, %s604_s21 }
  0xc4   : > { %p4620_p0 = scmp.ne.s32.totalorder %s604_s21, %s4619_s27  ;;  %p4628_p9 = scmp.lt.s32.totalorder %s4619_s27, %s4619_s27 }
  0xc6   : > { %p4622_p2 = pnand %p4620_p0, %p5029_p8  ;;  %p4629_p4 = por %p4628_p9, %p4627_p7 }
  0xc8   : > { %p4623_p5 = pneg %p4622_p2 }
  0xca   : > { %p4630_p10 = pnand %p4629_p4, %p4623_p5 }
  0xcc   : > { %4633 = shalt.err (!%p4630_p10)
}
  0xcd   : > { %4294 = dma.hbm_to_vmem [thread:$0]  (!%p5013_p6), %s5811_s7, 32, %s604_s21, [#allocation9], %s5810_s14, %s5810_s14, %s5809_s16  }
  0xce   : > { %s5812_s9 = sld [smem:[#allocation36_spill]] }
  0xd4   : > { %s4634_s19 = scalar_lea.hbm %s5812_s9, 32 }
  0xd5   : > { %p4635_p1 = scmp.ne.s32.totalorder %s5812_s9, %s4634_s19  ;;  %p4641_p12 = scmp.lt.u32.totalorder %s4634_s19, %s5812_s9 }
  0xd7   : > { %p4637_p3 = pnand %p4635_p1, %p5029_p8 }
  0xd9   : > { %p4638_p11 = pneg %p4637_p3 }
  0xdb   : > { %p4643_p13 = pnand %p4641_p12, %p4638_p11 }
  0xdd   : > { %4646 = shalt.err (!%p4643_p13)
}
  0xde   : > { %s4647_s22 = scalar_lea.vmem %s630_s25, 32  ;;  %p4655_p7 = scmp.lt.s32.totalorder %s630_s25, %s630_s25 }
  0xdf   : > { %p4648_p0 = scmp.ne.s32.totalorder %s630_s25, %s4647_s22  ;;  %p4656_p9 = scmp.lt.s32.totalorder %s4647_s22, %s4647_s22 }
  0xe1   : > { %p4650_p2 = pnand %p4648_p0, %p5029_p8  ;;  %p4657_p4 = por %p4656_p9, %p4655_p7 }
  0xe3   : > { %p4651_p5 = pneg %p4650_p2 }
  0xe5   : > { %p4658_p10 = pnand %p4657_p4, %p4651_p5 }
  0xe7   : > { %4661 = shalt.err (!%p4658_p10)
}
  0xe8   : > { %4300 = dma.hbm_to_vmem [thread:$0]  (!%p5013_p6), %s5812_s9, 32, %s630_s25, [#allocation12], %s5810_s14, %s5810_s14, %s5809_s16  }
  0xe9   : > { %s4847_s8 = smov [#allocation16]   ;;  %s4848_s18 = smov [#allocation17]  }
  0xea   : > { %s655_s4 = sshll.u32 %s4847_s8, 4  ;;  %s671_s17 = sshll.u32 %s4848_s18, 4  ;;  %s656_s4 = int_to_ptr.vmem [resolvable:$true] %s655_s4  ;;  %s672_s17 = int_to_ptr.vmem [resolvable:$true] %s671_s17 }
  0xeb   : > { %s5813_s11 = sld [smem:[#allocation38_spill]] }
  0xf1   : > { %s4662_s15 = scalar_lea.hbm %s5813_s11, 32 }
  0xf2   : > { %p4663_p1 = scmp.ne.s32.totalorder %s5813_s11, %s4662_s15  ;;  %p4669_p12 = scmp.lt.u32.totalorder %s4662_s15, %s5813_s11 }
  0xf4   : > { %p4665_p3 = pnand %p4663_p1, %p5029_p8 }
  0xf6   : > { %p4666_p11 = pneg %p4665_p3 }
  0xf8   : > { %p4671_p13 = pnand %p4669_p12, %p4666_p11 }
  0xfa   : > { %4674 = shalt.err (!%p4671_p13)
}
  0xfb   : > { %s4675_s25 = scalar_lea.vmem %s656_s4, 32  ;;  %p4683_p7 = scmp.lt.s32.totalorder %s656_s4, %s656_s4 }
  0xfc   : > { %p4676_p0 = scmp.ne.s32.totalorder %s656_s4, %s4675_s25  ;;  %p4684_p9 = scmp.lt.s32.totalorder %s4675_s25, %s4675_s25 }
  0xfe   : > { %p4678_p2 = pnand %p4676_p0, %p5029_p8  ;;  %p4685_p4 = por %p4684_p9, %p4683_p7 }
 0x100   : > { %p4679_p5 = pneg %p4678_p2 }
 0x102   : > { %p4686_p10 = pnand %p4685_p4, %p4679_p5 }
 0x104   : > { %4689 = shalt.err (!%p4686_p10)
}
 0x105   : > { %4306 = dma.hbm_to_vmem [thread:$0]  (!%p5013_p6), %s5813_s11, 32, %s656_s4, [#allocation15], %s5810_s14, %s5810_s14, %s5809_s16  }
 0x106   : > { %s4690_s0 = scalar_lea.hbm %s5744_s13, 32 }
 0x107   : > { %p4691_p1 = scmp.ne.s32.totalorder %s5744_s13, %s4690_s0  ;;  %p4697_p12 = scmp.lt.u32.totalorder %s4690_s0, %s5744_s13 }
 0x109   : > { %p4693_p3 = pnand %p4691_p1, %p5029_p8 }
 0x10b   : > { %p4694_p11 = pneg %p4693_p3 }
 0x10d   : > { %p4699_p13 = pnand %p4697_p12, %p4694_p11 }
 0x10f   : > { %4702 = shalt.err (!%p4699_p13)
}
 0x110   : > { %s4703_s21 = scalar_lea.vmem %s672_s17, 32  ;;  %p4711_p7 = scmp.lt.s32.totalorder %s672_s17, %s672_s17 }
 0x111   : > { %p4704_p0 = scmp.ne.s32.totalorder %s672_s17, %s4703_s21  ;;  %p4712_p9 = scmp.lt.s32.totalorder %s4703_s21, %s4703_s21 }
 0x113   : > { %p4706_p2 = pnand %p4704_p0, %p5029_p8  ;;  %p4713_p4 = por %p4712_p9, %p4711_p7 }
 0x115   : > { %p4707_p5 = pneg %p4706_p2 }
 0x117   : > { %p4714_p10 = pnand %p4713_p4, %p4707_p5 }
 0x119   : > { %4717 = shalt.err (!%p4714_p10)
}
 0x11a   : > { %4309 = dma.hbm_to_vmem [thread:$0]  (!%p5013_p6), %s5744_s13, 32, %s672_s17, [#allocation18], %s5810_s14, %s5810_s14, %s5809_s16  }
 0x11b   : > { %s3820_s6 = sadd.s32 4294967294, %s4834_s30   ;;  %s5229_s5 = sadd.s32 1, %s4834_s30  }
 0x11c   : > { %s50_s27 = sadd.s32 1, %s4830_s29  ;;  %s47_s8 = ssub.s32 %s4834_s30, %s5229_s5 }
 0x11d   : > { %p57_p8 = scmp.ne.s32.totalorder %s4830_s29, %s4826_s28  ;;  %p48_p1 = scmp.eq.s32.totalorder %s47_s8, 0 }
 0x11e   : > { %p58_p3 = scmp.eq.s32.totalorder %s4834_s30, 0  ;;  %p63_p11 = scmp.ne.s32.totalorder %s4826_s28, %s4822_s3 }
 0x11f   : > { %p533_p12 = scmp.eq.s32.totalorder %s4997_s23, 1  ;;  %p5814_p0 = scmp.eq.s32.totalorder %s4997_s23, 0 }
 0x120   : > { %s5241_s18 = scalar_select %p48_p1, %s4830_s29, %s50_s27  }
 0x121   : > { %p59_p13 = por %p58_p3, %p57_p8  ;;  %p5245_p2 = por %p5814_p0, %p63_p11 }
 0x122   : > { %p5249_p6 = por %p533_p12, %p57_p8  ;;  %p539_p5 = scmp.eq.s32.totalorder %s3820_s6, 1 }
 0x123   : > { %p4327_p7 = scmp.lt.s32.totalorder %s4834_s30, 2  ;;  %s709_s14 = sand.u32 1, %s4830_s29  }
 0x124   : > { %s5816_s16 = scalar_select %p5249_p6, 1, 0 }
 0x125   : > { %p5255_p9 = por %p539_p5, %p63_p11  ;;  %s3832_s0 = sshll.u32 %s709_s14, 3 }
 0x126   : > { %s3833_s15 = sshll.u32 %s4834_s30, 7  ;;  %s5818_s22 = sld [smem:[#allocation27_spill]] }
 0x127   : > { %s5817_s17 = scalar_select %p5255_p9, 1, 0 }
 0x128   : > { %s713_s4 = scalar_lea.vmem [#allocation2], %s3832_s0  ;;  %p5265_p4 = pnand %p4327_p7, %p59_p13 }
 0x129   : > { %s720_s25 = sshll.u32 %s713_s4, 4  ;;  %s710_s27 = scalar_lea.sflag [#allocation3], %s709_s14  ;;  %s5269_s25 = int_to_ptr.vmem [resolvable:$true] %s720_s25 }
 0x12a   : > { %p4720_p8 = pneg %p5265_p4 }
 0x12c   : > { %s5263_s21 = scalar_lea.hbm %s5818_s22, %s3833_s15  ;;  %s4723_s24 = scalar_lea.hbm %s5818_s22, 256 }
 0x12d   : > { %s4718_s8 = scalar_lea.hbm %s5263_s21, 128  ;;  %p4724_p11 = scmp.lt.u32.totalorder %s5263_s21, %s5818_s22 }
 0x12e   : > { %p4719_p10 = scmp.ne.s32.totalorder %s5263_s21, %s4718_s8  ;;  %p4725_p12 = scmp.lt.u32.totalorder %s4723_s24, %s4718_s8 }
 0x12f   : > { %p4727_p0 = scmp.lt.u32.totalorder %s4718_s8, %s5263_s21 }
 0x130   : > { %p4721_p1 = pnand %p4720_p8, %p4719_p10  ;;  %p4726_p13 = por %p4725_p12, %p4724_p11 }
 0x132   : > { %p4722_p3 = pneg %p4721_p1  ;;  %p4728_p5 = por %p4727_p0, %p4726_p13 }
 0x134   : > { %p4729_p7 = pnand %p4728_p5, %p4722_p3 }
 0x136   : > { %4732 = shalt.err (!%p4729_p7)
}
 0x137   : > { %s4733_s14 = scalar_lea.vmem %s5269_s25, 128  ;;  %s4849_s15 = smov [#allocation2]  }
 0x138   : > { %p4734_p10 = scmp.ne.s32.totalorder %s5269_s25, %s4733_s14  ;;  %s4738_s0 = sshll.u32 %s4849_s15, 4  ;;  %s4739_s0 = int_to_ptr.vmem [resolvable:$false] %s4738_s0 }
 0x139   : > { %s4740_s26 = scalar_lea.vmem %s4739_s0, 256  ;;  %p4741_p6 = scmp.lt.s32.totalorder %s5269_s25, %s4739_s0 }
 0x13a   : > { %p4736_p1 = pnand %p4734_p10, %p4720_p8  ;;  %p4742_p11 = scmp.lt.s32.totalorder %s4740_s26, %s4733_s14 }
 0x13c   : > { %p4737_p9 = pneg %p4736_p1  ;;  %p4743_p12 = por %p4742_p11, %p4741_p6 }
 0x13e   : > { %p4744_p13 = pnand %p4743_p12, %p4737_p9 }
 0x140   : > { %4747 = shalt.err (!%p4744_p13)
}
 0x141   : > { %4313 = dma.hbm_to_vmem [thread:$0]  (!%p5265_p4), %s5263_s21, 128, %s5269_s25, %s710_s27  }
 0x142   : > { %p5820_p3 = scmp.ne.s32.totalorder %s5801_s1, 0 }
 0x143   : > { %s5299_s8 = sand.u32 (!%p5820_p3), 1, %s4826_s28  }
 0x144   : > { %737 = sbr.rel (%p5820_p3) target bundleno = 6565 (0x19a5), region = 108  ;;  %s5774_s24 = sshll.u32 (!%p5820_p3), %s5299_s8, 3 }
 0x145   : > { %s740_s4 = scalar_lea.sflag (!%p5820_p3), [#allocation3], %s5299_s8  ;;  %s5305_s14 = scalar_lea.vmem (!%p5820_p3), [#allocation2], %s5774_s24 }
 0x14b   : > { %4793 = dma.done.wait (%p5245_p2), %s740_s4, 128  }
 0x14c   : > { %4795 = vsyncadd (%p5245_p2), %s740_s4, 4294967168  ;;  %p5821_p6 = scmp.eq.s32.totalorder %s4997_s23, 0 }
 0x14e   : > { %4797 = dma.done.wait (%p5821_p6), [#allocation6], 64   ;;  %p5822_p9 = pmov %p5821_p6 }
 0x14f   : > { %p5823_p4 = pmov %p5821_p6 }
 0x150   : > { %4799 = vsyncadd (%p5822_p9), [#allocation6], 4294967232 }
 0x151   : > { %4801 = dma.done.wait (%p5823_p4), [#allocation9], 544   ;;  %p5824_p8 = pmov %p5823_p4 }
 0x152   : > { %p5825_p0 = pmov %p5823_p4 }
 0x153   : > { %4803 = vsyncadd (%p5824_p8), [#allocation9], 4294966752 }
 0x154   : > { %4805 = dma.done.wait (%p5825_p0), [#allocation12], 544   ;;  %p5826_p5 = pmov %p5825_p0 }
 0x155   : > { %p5827_p2 = pmov %p5825_p0 }
 0x156   : > { %4807 = vsyncadd (%p5826_p5), [#allocation12], 4294966752 }
 0x157   : > { %4809 = dma.done.wait (%p5827_p2), [#allocation15], 544   ;;  %p5828_p7 = pmov %p5825_p0 }
 0x158   : > { %p5829_p10 = pmov %p5825_p0 }
 0x159   : > { %4811 = vsyncadd (%p5828_p7), [#allocation15], 4294966752 }
 0x15a   : > { %4813 = dma.done.wait (%p5829_p10), [#allocation18], 32   ;;  %p5830_p1 = pmov %p5825_p0 }
 0x15b   : > { %p845_p11 = scmp.lt.s32.totalorder %s4997_s23, 1  ;;  %v4850_v0 = vmov 0.0   ;;  %vm4851_vm0 = vmmov 0   ;;  %s5831_s6 = sld [smem:[#allocation28_spill]]  ;;  %vm879_vm1 = vcmask 261120   ;;  %v5358_v8 = vld [vmem:[%s5305_s14] sm:$0xff] }
 0x15c   : > { %4815 = vsyncadd (%p5830_p1), [#allocation18], 4294967264  ;;  %4042 = vmatprep.subr.bf16.mxu1 %v4850_v0  ;;  %4046 = vmatprep.mubr.msk.bf16.mxu1 %vm4851_vm0, %v4850_v0  ;;  %s5832_s26 = sld [smem:[#allocation31_spill]]  ;;  %v855_v9 = vpack.c.bf16 %v5358_v8, %v5358_v8  ;;  %v3852_v10 = vld [vmem:[#allocation7] ss:$0 sm:$0xff]  ;;  %s4852_s7 = smov 104  }
 0x15d   : > { %s846_s1 = scalar_select %p845_p11, %s4997_s23, 1  ;;  %4034 = vmatprep.subr.bf16.mxu0 %v4850_v0  ;;  %4038 = vmatprep.mubr.msk.bf16.mxu0 %vm4851_vm0, %v4850_v0  ;;  %v3848_v14 = vld [vmem:[#allocation5] ss:$0 sm:$0xff]  ;;  %v4398_v25 = vld [vmem:[#allocation8] sm:$0xff]   ;;  %v4399_v26 = vld [vmem:[#allocation8 + $0x8] sm:$0xff]   ;;  %vm1152_vm2 = vcmask 1043456  }
 0x15e   : > { %s4853_s9 = smov 120   ;;  %s4854_s2 = smov 112   ;;  %vm1148_vm3 = vcmask 64512   ;;  %v3856_v41 = vld [vmem:[#allocation10] ss:$0 sm:$0xff]  ;;  %vm1338_vm4 = vcmask 130048  }
 0x15f   : > { %s3958_s19 = sshll.u32 %s846_s1, 4  ;;  %s5833_s1 = sld [smem:[#allocation29_spill]]  ;;  %vm1913_vm5 = vcmask 195584   ;;  %vm2121_vm6 = vcmask 523264  }
 0x160   : > { %s5778_s24 = smov 16   ;;  %s5777_s14 = smov 8  }
 0x161   : > { %s849_s27 = scalar_lea.vmem %s5831_s6, %s3958_s19  ;;  %s5776_s19 = smov 24  }
 0x162   : > { %v4394_v1 = vld [vmem:[%s5832_s26] sm:$0xff]   ;;  %v4395_v2 = vld [vmem:[%s5832_s26 + $0x8] sm:$0xff]   ;;  %s5834_s21 = sld [smem:[#allocation39_spill]]  ;;  %s5841_s25 = sld [smem:[#allocation45_spill]] }
 0x163   : > { %4043 = vmatpush3.bf16.msra.mxu1 %v4394_v1  ;;  %v852_v3 = vld [vmem:[%s849_s27] sm:$0xff]  ;;  %v853_v4 = vld [vmem:[%s849_s27 + $0x8] sm:$0xff]  ;;  %s5842_s4 = sld [smem:[#allocation43_spill]]  ;;  %s3955_s10 = sshll.u32 %s4997_s23, 7 }
 0x164   : > { %4044 = vmatprep.subr.bf16.mxu1 %v4850_v0  ;;  %v5355_v7 = vpack.c.bf16 %v853_v4, %v852_v3  ;;  %s5845_s11 = sshll.u32 %s5299_s8, 3  ;;  %s3639_s23 = scalar_lea.sflag [#allocation4], %s5299_s8 }
 0x165   : > { %v4396_v5 = vld [vmem:[%s5833_s1] sm:$0xff]   ;;  %v4397_v6 = vld [vmem:[%s5833_s1 + $0x8] sm:$0xff]   ;;  %s844_s15 = scalar_lea.vmem [#allocation19], %s5845_s11  ;;  %p5847_p13 = scmp.ne.s32.totalorder %s5816_s16, 0 }
 0x166   : > { %4035 = vmatpush3.bf16.msra.mxu0 %v4396_v5  ;;  %s3652_s0 = sshll.u32 %s844_s15, 4  ;;  %s4860_s11 = smov [#allocation19]   ;;  %s5689_s0 = int_to_ptr.vmem [resolvable:$true] %s3652_s0 }
 0x167   : > { %4045 = vmatpush3.bf16.msra.mxu1 %v4395_v2  ;;  %4036 = vmatprep.subr.bf16.mxu0 %v4850_v0  ;;  %s4752_s6 = sshll.u32 %s4860_s11, 4  ;;  %s4753_s6 = int_to_ptr.vmem [resolvable:$false] %s4752_s6 }
 0x168   : > { %4058 = vmatprep.subr.bf16.mxu1 %v4850_v0  ;;  %s4754_s27 = scalar_lea.vmem %s4753_s6, 256  ;;  %p4755_p9 = scmp.lt.s32.totalorder %s5689_s0, %s4753_s6 }
 0x16a   : > { %4047 = vmatmul.mubr.msk.bf16.vlgmr.msra.gmra.mrb[0].mxu1 %vm879_vm1, %v5355_v7  ;;  %4037 = vmatpush3.bf16.msra.mxu0 %v4397_v6 }
 0x16b   : > { %4060 = vmatprep.mubr.msk.bf16.mxu1 %vm4851_vm0, %v4850_v0  ;;  %4050 = vmatprep.subr.bf16.mxu0 %v4850_v0 }
 0x16d   : > { %4039 = vmatmul.mubr.msk.bf16.vlgmr.msra.gmra.mrb[0].mxu0 %vm879_vm1, %v855_v9 }
 0x16e   : > { %4054 = vmatprep.mubr.msk.bf16.mxu0 %vm4851_vm0, %v4850_v0  ;;  %4051 = vmatpush3.bf16.msra.mxu0 %v4398_v25 }
 0x16f   : > { %4052 = vmatprep.subr.bf16.mxu0 %v4850_v0 }
 0x172   : > { %4053 = vmatpush3.bf16.msra.mxu0 %v4399_v26 }
 0x173   : > { %4064 = vmatprep.subr.bf16.mxu0 %v4850_v0 }
 0x175   : > { %4055 = vmatmul.mubr.msk.bf16.vlgmr.msra.gmra.mrb[4].mxu0 %vm879_vm1, %v5355_v7 }
 0x176   : > { %4066 = vmatprep.mubr.msk.bf16.mxu0 %vm4851_vm0, %v4850_v0 }
 0x23d   : > { %v983_v11 = vpop.f32.mrb[0].mxu1 }
 0x23e   : > { %v4048_v12 = vpop.f32.mrb[1].mxu1  ;;  %v984_v15 = vadd.f32 %v3852_v10, %v983_v11 }
 0x23f   : > { %v986_v13 = vpop.f32.mrb[2].mxu1 }
 0x240   : > { %v987_v16 = vadd.f32 %v3852_v10, %v986_v13  ;;  %v4049_v17 = vpop.f32.mrb[3].mxu1  ;;  %v917_v18 = vpop.f32.mrb[0].mxu0 }
 0x241   : > { %v4040_v19 = vpop.f32.mrb[1].mxu0  ;;  %v918_v21 = vadd.f32 %v3848_v14, %v917_v18 }
 0x242   : > { %v1062_v20 = vpack.c.bf16 %v987_v16, %v984_v15  ;;  %v920_v22 = vpop.f32.mrb[2].mxu0 }
 0x243   : > { %v4041_v23 = vpop.f32.mrb[3].mxu0  ;;  %v1054_v24 = vpack.c.bf16 %v918_v21, %v918_v21 }
 0x244   : > { %1070 = vrot.lane.b32.xlu1 %v1062_v20, %s4852_s7  ;;  %1064 = vrot.lane.b32.xlu0 %v1062_v20, %s4853_s9 }
 0x248   : > { %1067 = vrot.lane.b32.xlu0 %v1062_v20, %s4854_s2  ;;  %1056 = vrot.lane.b32.xlu1 %v1054_v24, %s4853_s9  ;;  %v1047_v42 = vpop.f32.mrb[4].mxu0 }
 0x249   : > { %v1048_v43 = vadd.f32 %v3856_v41, %v1047_v42  ;;  %v4056_v44 = vpop.f32.mrb[5].mxu0 }
 0x24a   : > { %v1050_v45 = vpop.f32.mrb[6].mxu0 }
 0x24b   : > { %v1051_v46 = vadd.f32 %v3856_v41, %v1050_v45  ;;  %v4057_v47 = vpop.f32.mrb[7].mxu0 }
 0x24c   : > { %1058 = vrot.lane.b32.xlu0 %v1054_v24, %s4854_s2  ;;  %1060 = vrot.lane.b32.xlu1 %v1054_v24, %s4852_s7 }
 0x24d   : > { %v1073_v48 = vpack.c.bf16 %v1051_v46, %v1048_v43 }
 0x26a   : > { %1084 = vxpose.xlu0.c.b16.start.end [1/1] (short) (narrow) %v1062_v20, 16 }
 0x2b6   : > { %v1065_v27 = vpop.permute.xlu0 %1064  ;;  %v1071_v29 = vpop.permute.xlu1 %1070 }
 0x2b7   : > { %1100 = vxpose.xlu1.c.b16.start.end [1/1] (short) (narrow) %v1065_v27, 16 }
 0x2ba   : > { %v1068_v28 = vpop.permute.xlu0 %1067  ;;  %v1057_v33 = vpop.permute.xlu1 %1056 }
 0x2bb   : > { %1116 = vxpose.xlu0.c.b16.start.end [1/1] (short) (narrow) %v1068_v28, 16 }
 0x2be   : > { %v1059_v30 = vpop.permute.xlu0 %1058  ;;  %v1061_v34 = vpop.permute.xlu1 %1060 }
 0x2bf   : > { %1132 = vxpose.xlu0.c.b16.start.end [1/1] (short) (narrow) %v1071_v29, 16 }
 0x2d0   : > { %v1092_v31 = vpop.trf.xlu0 }
 0x2d1   : > { %v1154_v32 = vsel %vm1152_vm2, %v1092_v31, 0 }
 0x2d2   : > { %4059 = vmatpush3.bf16.msra.mxu1 %v1154_v32 }
 0x2d3   : > { %4070 = vmatprep.subr.bf16.mxu1 %v4850_v0 }
 0x2d5   : > { %4061 = vmatmul.mubr.msk.bf16.vlgmr.msra.gmra.mrb[4].mxu1 %vm1148_vm3, %v1054_v24 }
 0x2d6   : > { %4072 = vmatprep.mubr.msk.bf16.mxu1 %vm4851_vm0, %v4850_v0 }
 0x31d   : > { %v1108_v35 = vpop.trf.xlu1 }
 0x31e   : > { %v1200_v36 = vsel %vm1152_vm2, %v1108_v35, 0 }
 0x31f   : > { %4065 = vmatpush3.bf16.msra.mxu0 %v1200_v36 }
 0x320   : > { %4076 = vmatprep.subr.bf16.mxu0 %v4850_v0 }
 0x321   : > { %v1124_v37 = vpop.trf.xlu0 }
 0x322   : > { %v1246_v38 = vsel %vm1152_vm2, %v1124_v37, 0  ;;  %4067 = vmatmul.mubr.msk.bf16.vlgmr.msra.gmra.mrb[8].mxu0 %vm1148_vm3, %v1057_v33 }
 0x323   : > { %4071 = vmatpush3.bf16.msra.mxu1 %v1246_v38  ;;  %4078 = vmatprep.mubr.msk.bf16.mxu0 %vm4851_vm0, %v4850_v0 }
 0x324   : > { %4082 = vmatprep.subr.bf16.mxu1 %v4850_v0 }
 0x325   : > { %v1140_v39 = vpop.trf.xlu0 }
 0x326   : > { %v1292_v40 = vsel %vm1152_vm2, %v1140_v39, 0  ;;  %4073 = vmatmul.mubr.msk.bf16.vlgmr.msra.gmra.mrb[8].mxu1 %vm1148_vm3, %v1059_v30 }
 0x327   : > { %4077 = vmatpush3.bf16.msra.mxu0 %v1292_v40  ;;  %4084 = vmatprep.mubr.msk.bf16.mxu1 %vm4851_vm0, %v4850_v0 }
 0x328   : > { %4088 = vmatprep.subr.bf16.mxu0 %v4850_v0 }
 0x32a   : > { %4079 = vmatmul.mubr.msk.bf16.vlgmr.msra.gmra.mrb[12].mxu0 %vm1148_vm3, %v1061_v34 }
 0x32b   : > { %4090 = vmatprep.mubr.msk.bf16.mxu0 %vm4851_vm0, %v4850_v0 }
 0x3a8   : > { %v1190_v49 = vpop.f32.mrb[4].mxu1 }
 0x3a9   : > { %v1334_v50 = vmul.f32 0.35355338, %v1190_v49  ;;  %v4062_v51 = vpop.f32.mrb[5].mxu1 }
 0x3aa   : > { %v1193_v52 = vpop.f32.mrb[6].mxu1 }
 0x3ab   : > { %v4063_v53 = vpop.f32.mrb[7].mxu1  ;;  %v1339_v54 = vsel %vm1338_vm4, %v1334_v50, -inf }
 0x3ac   : > { %1340 = vmax.xlane.f32.xlu1 %v1339_v54 }
 0x3f5   : > { %v1236_v55 = vpop.f32.mrb[8].mxu0 }
 0x3f6   : > { %v1335_v56 = vmul.f32 0.35355338, %v1236_v55  ;;  %v4068_v57 = vpop.f32.mrb[9].mxu0 }
 0x3f7   : > { %v1239_v58 = vpop.f32.mrb[10].mxu0 }
 0x3f8   : > { %v4069_v59 = vpop.f32.mrb[11].mxu0  ;;  %v1342_v60 = vsel %vm1338_vm4, %v1335_v56, -inf }
 0x3f9   : > { %v1282_v61 = vpop.f32.mrb[8].mxu1  ;;  %1343 = vmax.xlane.f32.xlu0 %v1342_v60 }
 0x3fa   : > { %v1336_v62 = vmul.f32 0.35355338, %v1282_v61  ;;  %v4074_v63 = vpop.f32.mrb[9].mxu1 }
 0x3fb   : > { %v1285_v1 = vpop.f32.mrb[10].mxu1 }
 0x3fc   : > { %v4075_v2 = vpop.f32.mrb[11].mxu1  ;;  %v1345_v3 = vsel %vm1338_vm4, %v1336_v62, -inf }
 0x3fd   : > { %1346 = vmax.xlane.f32.xlu1 %v1345_v3  ;;  %v1328_v4 = vpop.f32.mrb[12].mxu0 }
 0x3fe   : > { %v1337_v5 = vmul.f32 0.35355338, %v1328_v4  ;;  %v4080_v6 = vpop.f32.mrb[13].mxu0 }
 0x3ff   : > { %v1331_v9 = vpop.f32.mrb[14].mxu0 }
 0x400   : > { %v4081_v10 = vpop.f32.mrb[15].mxu0  ;;  %v1348_v11 = vsel %vm1338_vm4, %v1337_v5, -inf }
 0x401   : > { %1349 = vmax.xlane.f32.xlu0 %v1348_v11 }
 0x40e   : > { %1075 = vrot.lane.b32.xlu1 %v1073_v48, %s4853_s9 }
 0x412   : > { %1081 = vrot.lane.b32.xlu1 %v1073_v48, %s4852_s7 }
 0x439   : > { %v1341_v12 = vpop.xlane.xlu1 %1340 }
 0x43a   : > { %v1351_v13 = vsub.f32 %v1334_v50, %v1341_v12 }
 0x43c   : > { %v1355_v14 = vmul.f32 1.442695, %v1351_v13 }
 0x43e   : > { %4424 = vpow2.f32 %v1355_v14 }
 0x448   : > { %v4425_v15 = vpop.eup %4424 }
 0x449   : > { %v1363_v16 = vsel %vm1338_vm4, %v4425_v15, 0.0 }
 0x44a   : > { %1364 = vadd.xlane.f32.xlu0 %v1363_v16 }
 0x486   : > { %v1344_v17 = vpop.xlane.xlu0 %1343 }
 0x487   : > { %v1352_v18 = vsub.f32 %v1335_v56, %v1344_v17  ;;  %v1768_v17 = vlaneseq }
 0x489   : > { %v1357_v19 = vmul.f32 1.442695, %v1352_v18  ;;  %v4856_v18 = vmov 1934713408  }
 0x48a   : > { %v1347_v20 = vpop.xlane.xlu1 %1346 }
 0x48b   : > { %4426 = vpow2.f32 %v1357_v19  ;;  %v1353_v21 = vsub.f32 %v1336_v62, %v1347_v20  ;;  %v1798_v19 = vunpack.c.l.s4 %v4856_v18 }
 0x48d   : > { %v1359_v22 = vmul.f32 1.442695, %v1353_v21  ;;  %v1769_v21 = vshrl.u32 %v1768_v17, 7 }
 0x48e   : > { %v1350_v27 = vpop.xlane.xlu0 %1349  ;;  %v1076_v37 = vpop.permute.xlu1 %1075 }
 0x48f   : > { %4428 = vpow2.f32 %v1359_v22  ;;  %v1354_v28 = vsub.f32 %v1337_v5, %v1350_v27 }
 0x491   : > { %v1361_v29 = vmul.f32 1.442695, %v1354_v28 }
 0x492   : > { %v1082_v38 = vpop.permute.xlu1 %1081 }
 0x493   : > { %4430 = vpow2.f32 %v1361_v29 }
 0x495   : > { %v4427_v23 = vpop.eup %4426 }
 0x496   : > { %v1366_v24 = vsel %vm1338_vm4, %v4427_v23, 0.0 }
 0x497   : > { %1367 = vadd.xlane.f32.xlu0 %v1366_v24  ;;  %v1799_v24 = vunpack.c.0.s8 %v1798_v19 }
 0x499   : > { %v4429_v25 = vpop.eup %4428 }
 0x49a   : > { %v1369_v26 = vsel %vm1338_vm4, %v4429_v25, 0.0 }
 0x49b   : > { %1370 = vadd.xlane.f32.xlu1 %v1369_v26 }
 0x49d   : > { %v4431_v30 = vpop.eup %4430 }
 0x49e   : > { %v1372_v31 = vsel %vm1338_vm4, %v4431_v30, 0.0 }
 0x4ad   : > { %1078 = vrot.lane.b32.xlu0 %v1073_v48, %s4854_s2 }
 0x4c8   : > { %1387 = vxpose.xlu1.c.b16.start.end [1/1] (short) (narrow) %v1073_v48, 16 }
 0x4cc   : > { %1373 = vadd.xlane.f32.xlu0 %v1372_v31  ;;  %v5437_v31 = vsub.s32 %v1799_v24, %v1769_v21 }
 0x4d7   : > { %v1365_v32 = vpop.xlane.xlu0 %1364 }
 0x4d8   : > { %4432 = vrcp.f32 %v1365_v32 }
 0x4e2   : > { %v4433_v33 = vpop.eup %4432 }
 0x4e3   : > { %v1379_v34 = vmul.f32 %v4433_v33, %v4425_v15  ;;  %v4855_v15 = vmov 1983009808  }
 0x4e4   : > { %v1766_v16 = vunpack.c.l.s4 %v4855_v15 }
 0x4e5   : > { %v1383_v35 = vpack.c.bf16 %v1379_v34, %v1379_v34 }
 0x4e6   : > { %v1767_v20 = vunpack.c.0.s8 %v1766_v16 }
 0x4e7   : > { %v1455_v36 = vsel %vm1338_vm4, %v1383_v35, 0 }
 0x4e8   : > { %4083 = vmatpush3.bf16.xpose.msra.mxu1 %v1455_v36  ;;  %v4400_v36 = vld [vmem:[#allocation11] sm:$0xff]  }
 0x4e9   : > { %4094 = vmatprep.subr.bf16.mxu1 %v4850_v0 }
 0x4f9   : > { %1403 = vxpose.xlu0.c.b16.start.end [1/1] (short) (narrow) %v1076_v37, 16 }
 0x524   : > { %v1368_v39 = vpop.xlane.xlu0 %1367 }
 0x525   : > { %4434 = vrcp.f32 %v1368_v39 }
 0x528   : > { %v1371_v40 = vpop.xlane.xlu1 %1370  ;;  %v1079_v41 = vpop.permute.xlu0 %1078 }
 0x529   : > { %4436 = vrcp.f32 %v1371_v40  ;;  %1419 = vxpose.xlu1.c.b16.start.end [1/1] (short) (narrow) %v1079_v41, 16 }
 0x52d   : > { %1435 = vxpose.xlu1.c.b16.start.end [1/1] (short) (narrow) %v1082_v38, 16 }
 0x52e   : > { %v1395_v42 = vpop.trf.xlu1 }
 0x52f   : > { %v4435_v43 = vpop.eup %4434  ;;  %4085 = vmatmul.mubr.msk.bf16.vlgmr.msra.gmra.mrb[12].mxu1 %vm1338_vm4, %v1395_v42 }
 0x530   : > { %v1380_v44 = vmul.f32 %v4435_v43, %v4427_v23  ;;  %4096 = vmatprep.mubr.msk.bf16.mxu1 %vm4851_vm0, %v4850_v0 }
 0x532   : > { %v1384_v45 = vpack.c.bf16 %v1380_v44, %v1380_v44 }
 0x533   : > { %v4437_v46 = vpop.eup %4436 }
 0x534   : > { %v1501_v47 = vsel %vm1338_vm4, %v1384_v45, 0  ;;  %v1381_v48 = vmul.f32 %v4437_v46, %v4429_v25  ;;  %v5435_v25 = vsub.s32 %v1767_v20, %v1769_v21  ;;  %v4401_v45 = vld [vmem:[#allocation11 + $0x8] sm:$0xff]  }
 0x535   : > { %4089 = vmatpush3.bf16.xpose.msra.mxu0 %v1501_v47 }
 0x536   : > { %v1385_v49 = vpack.c.bf16 %v1381_v48, %v1381_v48  ;;  %4100 = vmatprep.subr.bf16.mxu0 %v4850_v0 }
 0x538   : > { %v1547_v50 = vsel %vm1338_vm4, %v1385_v49, 0 }
 0x539   : > { %4095 = vmatpush3.bf16.xpose.msra.mxu1 %v1547_v50 }
 0x53a   : > { %4106 = vmatprep.subr.bf16.mxu1 %v4850_v0 }
 0x559   : > { %v1374_v51 = vpop.xlane.xlu0 %1373 }
 0x55a   : > { %4438 = vrcp.f32 %v1374_v51 }
 0x55f   : > { %v1411_v52 = vpop.trf.xlu0 }
 0x560   : > { %4091 = vmatmul.mubr.msk.bf16.vlgmr.msra.gmra.mrb[16].mxu0 %vm1338_vm4, %v1411_v52 }
 0x561   : > { %4102 = vmatprep.mubr.msk.bf16.mxu0 %vm4851_vm0, %v4850_v0 }
 0x564   : > { %v4439_v53 = vpop.eup %4438 }
 0x565   : > { %v1382_v54 = vmul.f32 %v4439_v53, %v4431_v30 }
 0x567   : > { %v1386_v55 = vpack.c.bf16 %v1382_v54, %v1382_v54 }
 0x569   : > { %v1593_v56 = vsel %vm1338_vm4, %v1386_v55, 0 }
 0x56a   : > { %4101 = vmatpush3.bf16.xpose.msra.mxu0 %v1593_v56 }
 0x56b   : > { %4114 = vmatprep.subr.bf16.mxu0 %v4850_v0 }
 0x58f   : > { %v1427_v57 = vpop.trf.xlu1 }
 0x590   : > { %4097 = vmatmul.mubr.msk.bf16.vlgmr.msra.gmra.mrb[16].mxu1 %vm1338_vm4, %v1427_v57 }
 0x591   : > { %4110 = vmatprep.mubr.msk.bf16.mxu1 %vm4851_vm0, %v4850_v0  ;;  %4107 = vmatpush3.bf16.msra.mxu1 %v4400_v36 }
 0x592   : > { %4108 = vmatprep.subr.bf16.mxu1 %v4850_v0 }
 0x593   : > { %v1443_v58 = vpop.trf.xlu1 }
 0x594   : > { %4103 = vmatmul.mubr.msk.bf16.vlgmr.msra.gmra.mrb[20].mxu0 %vm1338_vm4, %v1443_v58 }
 0x595   : > { %4118 = vmatprep.mubr.msk.bf16.mxu0 %vm4851_vm0, %v4850_v0  ;;  %4109 = vmatpush3.bf16.msra.mxu1 %v4401_v45 }
 0x596   : > { %4122 = vmatprep.subr.bf16.mxu1 %v4850_v0 }
 0x602   : > { %v1491_v59 = vpop.f32.mrb[12].mxu1 }
 0x603   : > { %v4086_v60 = vpop.f32.mrb[13].mxu1  ;;  %1635 = vxpose.xlu0.b32.start.end [1/1] (short) (narrow) %v1491_v59, 8 }
 0x604   : > { %v1494_v61 = vpop.f32.mrb[14].mxu1 }
 0x605   : > { %v4087_v62 = vpop.f32.mrb[15].mxu1 }
 0x633   : > { %v1537_v63 = vpop.f32.mrb[16].mxu0 }
 0x634   : > { %v4092_v1 = vpop.f32.mrb[17].mxu0  ;;  %1667 = vxpose.xlu1.b32.start.end [1/1] (short) (narrow) %v1537_v63, 8 }
 0x635   : > { %v1540_v2 = vpop.f32.mrb[18].mxu0 }
 0x636   : > { %v4093_v3 = vpop.f32.mrb[19].mxu0 }
 0x663   : > { %v1583_v4 = vpop.f32.mrb[16].mxu1 }
 0x664   : > { %1699 = vxpose.xlu0.b32.start.end [1/1] (short) (narrow) %v1583_v4, 8  ;;  %v4098_v5 = vpop.f32.mrb[17].mxu1 }
 0x665   : > { %v1586_v6 = vpop.f32.mrb[18].mxu1 }
 0x666   : > { %v4099_v9 = vpop.f32.mrb[19].mxu1 }
 0x667   : > { %v1629_v10 = vpop.f32.mrb[20].mxu0 }
 0x668   : > { %1731 = vxpose.xlu0.b32.start.end [1/1] (short) (narrow) %v1629_v10, 8  ;;  %v4104_v11 = vpop.f32.mrb[21].mxu0 }
 0x669   : > { %v1632_v12 = vpop.f32.mrb[22].mxu0 }
 0x66a   : > { %v4105_v13 = vpop.f32.mrb[23].mxu0  ;;  %v3870_v12 = vld [vmem:[#allocation13] ss:$0 sm:$0xff] }
 0x683   : > { %v1651_v14 = vpop.trf.xlu0 }
 0x6b4   : > { %v1683_v23 = vpop.trf.xlu1 }
 0x6e4   : > { %v1715_v22 = vpop.trf.xlu0 }
 0x6e5   : > { %v1763_v26 = vcombine.low %v1651_v14, %v1715_v22  ;;  %v1764_v27 = vcombine.high %v1651_v14, %v1715_v22 }
 0x6e7   : > { %v1771_v32 = vrot.slane %v1763_v26, %v5435_v25  ;;  %v1778_v33 = vrot.slane %v1764_v27, %v5435_v25  ;;  %v4402_v26 = vld [vmem:[#allocation14] sm:$0xff]   ;;  %v4403_v27 = vld [vmem:[#allocation14 + $0x8] sm:$0xff]  }
 0x6e8   : > { %v1747_v28 = vpop.trf.xlu0  ;;  %4115 = vmatpush3.bf16.msra.mxu0 %v4402_v26 }
 0x6e9   : > { %v1779_v29 = vcombine.low %v1683_v23, %v1747_v28  ;;  %v1780_v30 = vcombine.high %v1683_v23, %v1747_v28  ;;  %4116 = vmatprep.subr.bf16.mxu0 %v4850_v0  ;;  %v4405_v28 = vld [vmem:[%s5743_s12 + $0x8] sm:$0xff]  }
 0x6eb   : > { %v1787_v34 = vrot.slane %v1779_v29, %v5435_v25  ;;  %v1794_v35 = vrot.slane %v1780_v30, %v5435_v25 }
 0x6ec   : > { %4117 = vmatpush3.bf16.msra.mxu0 %v4403_v27 }
 0x6ed   : > { %v1795_v37 = vcombine.low %v1771_v32, %v1787_v34  ;;  %v1796_v38 = vcombine.high %v1771_v32, %v1787_v34  ;;  %v1811_v39 = vcombine.low %v1778_v33, %v1794_v35  ;;  %v1812_v40 = vcombine.high %v1778_v33, %v1794_v35  ;;  %4134 = vmatprep.subr.bf16.mxu0 %v4850_v0  ;;  %v3874_v34 = vld [vmem:[%s5834_s21] ss:$0 sm:$0xff] }
 0x6ef   : > { %v1803_v41 = vrot.slane %v1795_v37, %v5437_v31  ;;  %v1810_v42 = vrot.slane %v1796_v38, %v5437_v31  ;;  %v1819_v43 = vrot.slane %v1811_v39, %v5437_v31  ;;  %v1826_v44 = vrot.slane %v1812_v40, %v5437_v31  ;;  %v4406_v40 = vld [vmem:[%s5743_s12 + $0x10] sm:$0xff]  }
 0x6f1   : > { %v1831_v46 = vcombine.low %v1803_v41, %v1810_v42  ;;  %v3868_v47 = vcombine.high %v1803_v41, %v1810_v42  ;;  %v1847_v48 = vcombine.low %v1819_v43, %v1826_v44  ;;  %v3869_v49 = vcombine.high %v1819_v43, %v1826_v44  ;;  %v4407_v41 = vld [vmem:[%s5743_s12 + $0x18] sm:$0xff]  }
 0x6f2   : > { %v3876_v42 = vld [vmem:[#allocation16] ss:$0 sm:$0xff] }
 0x6f3   : > { %v1838_v50 = vrot.slane %v1831_v46, %v5435_v25  ;;  %v1846_v51 = vrot.slane %v3868_v47, %v5435_v25  ;;  %v1854_v52 = vrot.slane %v1847_v48, %v5435_v25  ;;  %v1862_v53 = vrot.slane %v3869_v49, %v5435_v25 }
 0x6f5   : > { %v1864_v54 = vcombine.high %v1838_v50, %v1846_v51  ;;  %v1880_v55 = vcombine.high %v1854_v52, %v1862_v53  ;;  %v1863_v56 = vcombine.low %v1838_v50, %v1846_v51  ;;  %v1879_v57 = vcombine.low %v1854_v52, %v1862_v53  ;;  %v3880_v50 = vld [vmem:[#allocation17] ss:$0 sm:$0xff] }
 0x6f7   : > { %v1878_v58 = vrot.slane %v1864_v54, %v5437_v31  ;;  %v1894_v59 = vrot.slane %v1880_v55, %v5437_v31  ;;  %v1871_v60 = vrot.slane %v1863_v56, %v5437_v31  ;;  %v1887_v61 = vrot.slane %v1879_v57, %v5437_v31 }
 0x6f9   : > { %v1897_v62 = vcombine.low %v1878_v58, %v1894_v59  ;;  %v1896_v63 = vcombine.high %v1871_v60, %v1887_v61  ;;  %v1895_v1 = vcombine.low %v1871_v60, %v1887_v61  ;;  %v1898_v2 = vcombine.high %v1878_v58, %v1894_v59 }
 0x6fb   : > { %1904 = vrot.lane.b32.xlu0 %v1897_v62, %s5778_s24  ;;  %1900 = vrot.lane.b32.xlu1 %v1896_v63, %s5777_s14  ;;  %v4408_v63 = vld [vmem:[%s5833_s1 + $0x10] sm:$0xff]   ;;  %s5836_s14 = sld [smem:[#allocation41_spill]]  ;;  %s5837_s24 = sld [smem:[#allocation42_spill]] }
 0x6ff   : > { %1908 = vrot.lane.b32.xlu1 %v1898_v2, %s5776_s19  ;;  %s5835_s19 = sld [smem:[#allocation40_spill]] }
 0x705   : > { %v3875_v36 = vld [vmem:[%s5835_s19] ss:$0 sm:$0xff] }
 0x76d   : > { %v1901_v3 = vpop.permute.xlu1 %1900  ;;  %v1905_v4 = vpop.permute.xlu0 %1904 }
 0x76e   : > { %v1911_v5 = vsel %vm1148_vm3, %v1895_v1, %v1901_v3  ;;  %v4409_v1 = vld [vmem:[%s5833_s1 + $0x18] sm:$0xff]   ;;  %s5844_s1 = sld [smem:[#allocation46_spill]] }
 0x76f   : > { %v1912_v9 = vsel %vm1338_vm4, %v1911_v5, %v1905_v4 }
 0x771   : > { %v1909_v6 = vpop.permute.xlu1 %1908 }
 0x772   : > { %v1914_v10 = vsel %vm1913_vm5, %v1912_v9, %v1909_v6  ;;  %v3886_v6 = vld [vmem:[%s5836_s14] ss:$0 sm:$0xff] }
 0x773   : > { %v1915_v11 = vpack.c.bf16 %v1914_v10, %v1914_v10  ;;  %v3887_v10 = vld [vmem:[%s5837_s24] ss:$0 sm:$0xff] }
 0x775   : > { %4111 = vmatmul.mubr.msk.bf16.vlgmr.msra.gmra.mrb[20].mxu1 %vm879_vm1, %v1915_v11 }
 0x776   : > { %4130 = vmatprep.mubr.msk.bf16.mxu1 %vm4851_vm0, %v4850_v0 }
 0x848   : > { %v1976_v13 = vpop.f32.mrb[20].mxu1 }
 0x849   : > { %v1977_v14 = vadd.f32 %v3870_v12, %v1976_v13  ;;  %v4112_v15 = vpop.f32.mrb[21].mxu1  ;;  %v4410_v13 = vld [vmem:[%s5832_s26 + $0x10] sm:$0xff]  }
 0x84a   : > { %v1979_v16 = vpop.f32.mrb[22].mxu1  ;;  %v4411_v15 = vld [vmem:[%s5832_s26 + $0x18] sm:$0xff]  }
 0x84b   : > { %v4113_v17 = vpop.f32.mrb[23].mxu1  ;;  %v1982_v18 = vadd.f32 %v1977_v14, %v5358_v8  ;;  %v4404_v8 = vld [vmem:[%s5743_s12] sm:$0xff]  }
 0x84c   : > { %4123 = vmatpush3.bf16.msra.mxu1 %v4404_v8 }
 0x84d   : > { %v1985_v19 = vsel %vm879_vm1, %v1982_v18, 0.0  ;;  %4124 = vmatprep.subr.bf16.mxu1 %v4850_v0 }
 0x84e   : > { %1986 = vadd.xlane.f32.xlu1 %v1985_v19 }
 0x850   : > { %4125 = vmatpush3.bf16.msra.mxu1 %v4405_v28 }
 0x851   : > { %4126 = vmatprep.subr.bf16.mxu1 %v4850_v0 }
 0x854   : > { %4127 = vmatpush3.bf16.msra.mxu1 %v4406_v40 }
 0x855   : > { %4128 = vmatprep.subr.bf16.mxu1 %v4850_v0 }
 0x858   : > { %4129 = vmatpush3.bf16.msra.mxu1 %v4407_v41 }
 0x859   : > { %4150 = vmatprep.subr.bf16.mxu1 %v4850_v0 }
 0x8db   : > { %v1987_v20 = vpop.xlane.xlu1 %1986 }
 0x8dc   : > { %v1989_v21 = vmul.f32 0.03125, %v1987_v20  ;;  %v3900_v20 = vld [vmem:[#allocation7 + $0x1] ss:$0 sm:$0xff] }
 0x8de   : > { %v1990_v22 = vsub.f32 %v1982_v18, %v1989_v21 }
 0x8e0   : > { %v1991_v23 = vmul.f32 %v1990_v22, %v1990_v22 }
 0x8e2   : > { %v1992_v24 = vsel %vm879_vm1, %v1991_v23, 0.0  ;;  %v3892_v23 = vld [vmem:[#allocation5 + $0x1] ss:$0 sm:$0xff] }
 0x8e3   : > { %1993 = vadd.xlane.f32.xlu0 %v1992_v24 }
 0x970   : > { %v1994_v29 = vpop.xlane.xlu0 %1993 }
 0x971   : > { %v1995_v30 = vmul.f32 0.03125, %v1994_v29 }
 0x973   : > { %v1996_v32 = vadd.f32 1e-05, %v1995_v30 }
 0x975   : > { %4440 = vrsqrt.f32 %v1996_v32  ;;  %v4412_v32 = vld [vmem:[#allocation8 + $0x10] sm:$0xff]  }
 0x97f   : > { %v4441_v33 = vpop.eup %4440 }
 0x980   : > { %v1998_v35 = vmul.f32 %v4441_v33, %v1990_v22  ;;  %v4413_v33 = vld [vmem:[#allocation8 + $0x18] sm:$0xff]  }
 0x982   : > { %v2005_v37 = vmul.f32 %v3874_v34, %v1998_v35 }
 0x984   : > { %v2012_v38 = vadd.f32 %v3875_v36, %v2005_v37 }
 0x986   : > { %v2013_v39 = vpack.c.bf16 %v2012_v38, %v2012_v38 }
 0x988   : > { %4119 = vmatmul.mubr.msk.bf16.vlgmr.msra.gmra.mrb[24].mxu0 %vm879_vm1, %v2013_v39 }
 0x989   : > { %4138 = vmatprep.mubr.msk.bf16.mxu0 %vm4851_vm0, %v4850_v0  ;;  %4135 = vmatpush3.bf16.msra.mxu0 %v4408_v63 }
 0x98a   : > { %4136 = vmatprep.subr.bf16.mxu0 %v4850_v0 }
 0x98d   : > { %4137 = vmatpush3.bf16.msra.mxu0 %v4409_v1 }
 0x98e   : > { %4142 = vmatprep.subr.bf16.mxu0 %v4850_v0 }
 0xa5b   : > { %v2074_v43 = vpop.f32.mrb[24].mxu0 }
 0xa5c   : > { %v2075_v44 = vadd.f32 %v3876_v42, %v2074_v43  ;;  %v4120_v45 = vpop.f32.mrb[25].mxu0 }
 0xa5d   : > { %v2077_v46 = vpop.f32.mrb[26].mxu0 }
 0xa5e   : > { %v2080_v47 = vmax.f32 %v2075_v44, 0.0  ;;  %v4121_v48 = vpop.f32.mrb[27].mxu0 }
 0xa60   : > { %v2081_v49 = vpack.c.bf16 %v2080_v47, %v2080_v47  ;;  %v3904_v47 = vld [vmem:[#allocation10 + $0x1] ss:$0 sm:$0xff] }
 0xa62   : > { %4131 = vmatmul.mubr.msk.bf16.vlgmr.msra.gmra.mrb[24].mxu1 %vm2121_vm6, %v2081_v49 }
 0xa63   : > { %4154 = vmatprep.mubr.msk.bf16.mxu1 %vm4851_vm0, %v4850_v0  ;;  %4151 = vmatpush3.bf16.msra.mxu1 %v4412_v32 }
 0xa64   : > { %4152 = vmatprep.subr.bf16.mxu1 %v4850_v0 }
 0xa67   : > { %4153 = vmatpush3.bf16.msra.mxu1 %v4413_v33 }
 0xa68   : > { %4164 = vmatprep.subr.bf16.mxu1 %v4850_v0 }
 0xa6a   : > { %4155 = vmatmul.mubr.msk.bf16.vlgmr.msra.gmra.mrb[28].mxu1 %vm879_vm1, %v5355_v7 }
 0xa6b   : > { %4166 = vmatprep.mubr.msk.bf16.mxu1 %vm4851_vm0, %v4850_v0 }
 0xb35   : > { %v2159_v51 = vpop.f32.mrb[24].mxu1 }
 0xb36   : > { %v2160_v52 = vadd.f32 %v3880_v50, %v2159_v51  ;;  %v4132_v53 = vpop.f32.mrb[25].mxu1 }
 0xb37   : > { %v2162_v54 = vpop.f32.mrb[26].mxu1 }
 0xb38   : > { %v4133_v55 = vpop.f32.mrb[27].mxu1  ;;  %v2165_v56 = vadd.f32 %v2160_v52, %v2012_v38 }
 0xb3a   : > { %v2168_v57 = vsel %vm879_vm1, %v2165_v56, 0.0 }
 0xb3b   : > { %2169 = vadd.xlane.f32.xlu1 %v2168_v57 }
 0xb3d   : > { %v2389_v48 = vpop.f32.mrb[28].mxu1 }
 0xb3e   : > { %v2390_v49 = vadd.f32 %v3904_v47, %v2389_v48  ;;  %v4156_v50 = vpop.f32.mrb[29].mxu1 }
 0xb3f   : > { %v2392_v51 = vpop.f32.mrb[30].mxu1 }
 0xb40   : > { %v2393_v52 = vadd.f32 %v3904_v47, %v2392_v51  ;;  %v4157_v53 = vpop.f32.mrb[31].mxu1 }
 0xb42   : > { %v2415_v54 = vpack.c.bf16 %v2393_v52, %v2390_v49 }
 0xbc8   : > { %v2170_v58 = vpop.xlane.xlu1 %2169 }
 0xbc9   : > { %v2171_v59 = vmul.f32 0.03125, %v2170_v58 }
 0xbcb   : > { %v2172_v60 = vsub.f32 %v2165_v56, %v2171_v59 }
 0xbcd   : > { %v2173_v61 = vmul.f32 %v2172_v60, %v2172_v60 }
 0xbcf   : > { %v2174_v62 = vsel %vm879_vm1, %v2173_v61, 0.0 }
 0xbd0   : > { %2175 = vadd.xlane.f32.xlu0 %v2174_v62 }
 0xc5d   : > { %v2176_v2 = vpop.xlane.xlu0 %2175 }
 0xc5e   : > { %v2177_v3 = vmul.f32 0.03125, %v2176_v2 }
 0xc60   : > { %v2178_v4 = vadd.f32 1e-05, %v2177_v3 }
 0xc62   : > { %4442 = vrsqrt.f32 %v2178_v4 }
 0xc6c   : > { %v4443_v5 = vpop.eup %4442 }
 0xc6d   : > { %v2180_v9 = vmul.f32 %v4443_v5, %v2172_v60 }
 0xc6f   : > { %v2187_v11 = vmul.f32 %v3886_v6, %v2180_v9 }
 0xc71   : > { %v5515_v12 = vadd.f32 %v3887_v10, %v2187_v11 }
 0xc73   : > { %v2195_v14 = vpack.c.bf16 %v5515_v12, %v5515_v12 }
 0xc75   : > { %4139 = vmatmul.mubr.msk.bf16.vlgmr.msra.gmra.mrb[28].mxu0 %vm879_vm1, %v2195_v14 }
 0xc76   : > { %4143 = vmatpush3.bf16.msra.mxu0 %v4410_v13  ;;  %4146 = vmatprep.mubr.msk.bf16.mxu0 %vm4851_vm0, %v4850_v0 }
 0xc77   : > { %4144 = vmatprep.subr.bf16.mxu0 %v4850_v0 }
 0xc7a   : > { %4145 = vmatpush3.bf16.msra.mxu0 %v4411_v15 }
 0xc7b   : > { %4158 = vmatprep.subr.bf16.mxu0 %v4850_v0 }
 0xc7d   : > { %4147 = vmatmul.mubr.msk.bf16.vlgmr.msra.gmra.mrb[32].mxu0 %vm879_vm1, %v5355_v7 }
 0xc7e   : > { %4160 = vmatprep.mubr.msk.bf16.mxu0 %vm4851_vm0, %v4850_v0 }
 0xd48   : > { %v2258_v16 = vpop.f32.mrb[28].mxu0 }
 0xd49   : > { %v4140_v17 = vpop.f32.mrb[29].mxu0  ;;  %v2259_v28 = vadd.f32 %v3892_v23, %v2258_v16 }
 0xd4a   : > { %v2261_v18 = vpop.f32.mrb[30].mxu0 }
 0xd4b   : > { %v4141_v19 = vpop.f32.mrb[31].mxu0  ;;  %v2396_v30 = vpack.c.bf16 %v2259_v28, %v2259_v28 }
 0xd50   : > { %v2323_v21 = vpop.f32.mrb[32].mxu0 }
 0xd51   : > { %v4148_v22 = vpop.f32.mrb[33].mxu0  ;;  %v2324_v26 = vadd.f32 %v3900_v20, %v2323_v21 }
 0xd52   : > { %v2326_v24 = vpop.f32.mrb[34].mxu0 }
 0xd53   : > { %v2327_v27 = vadd.f32 %v3900_v20, %v2326_v24  ;;  %v4149_v8 = vpop.f32.mrb[35].mxu0 }
 0xd55   : > { %v2404_v29 = vpack.c.bf16 %v2327_v27, %v2324_v26 }
 0xd57   : > { %2409 = vrot.lane.b32.xlu0 %v2404_v29, %s4854_s2  ;;  %2406 = vrot.lane.b32.xlu1 %v2404_v29, %s4853_s9 }
 0xd5b   : > { %2400 = vrot.lane.b32.xlu0 %v2396_v30, %s4854_s2  ;;  %2412 = vrot.lane.b32.xlu1 %v2404_v29, %s4852_s7 }
 0xd5f   : > { %2398 = vrot.lane.b32.xlu1 %v2396_v30, %s4853_s9 }
 0xd63   : > { %2402 = vrot.lane.b32.xlu1 %v2396_v30, %s4852_s7 }
 0xd79   : > { %2426 = vxpose.xlu0.c.b16.start.end [1/1] (short) (narrow) %v2404_v29, 16 }
 0xdc9   : > { %v2410_v34 = vpop.permute.xlu0 %2409  ;;  %v2407_v35 = vpop.permute.xlu1 %2406 }
 0xdca   : > { %2458 = vxpose.xlu0.c.b16.start.end [1/1] (short) (narrow) %v2410_v34, 16  ;;  %2442 = vxpose.xlu1.c.b16.start.end [1/1] (short) (narrow) %v2407_v35, 16 }
 0xdcd   : > { %v2413_v36 = vpop.permute.xlu1 %2412  ;;  %v2401_v37 = vpop.permute.xlu0 %2400 }
 0xdce   : > { %2474 = vxpose.xlu0.c.b16.start.end [1/1] (short) (narrow) %v2413_v36, 16 }
 0xdd1   : > { %v2399_v7 = vpop.permute.xlu1 %2398 }
 0xdd5   : > { %v2403_v40 = vpop.permute.xlu1 %2402 }
 0xddf   : > { %v2434_v38 = vpop.trf.xlu0 }
 0xde0   : > { %v2494_v39 = vsel %vm1152_vm2, %v2434_v38, 0 }
 0xde1   : > { %4159 = vmatpush3.bf16.msra.mxu0 %v2494_v39 }
 0xde2   : > { %4170 = vmatprep.subr.bf16.mxu0 %v4850_v0 }
 0xde4   : > { %4161 = vmatmul.mubr.msk.bf16.vlgmr.msra.gmra.mrb[36].mxu0 %vm1148_vm3, %v2396_v30 }
 0xde5   : > { %4172 = vmatprep.mubr.msk.bf16.mxu0 %vm4851_vm0, %v4850_v0 }
 0xe30   : > { %v2466_v41 = vpop.trf.xlu0  ;;  %v2450_v42 = vpop.trf.xlu1 }
 0xe31   : > { %v2586_v43 = vsel %vm1152_vm2, %v2466_v41, 0  ;;  %v2540_v44 = vsel %vm1152_vm2, %v2450_v42, 0 }
 0xe32   : > { %4165 = vmatpush3.bf16.msra.mxu1 %v2540_v44  ;;  %4171 = vmatpush3.bf16.msra.mxu0 %v2586_v43 }
 0xe33   : > { %4176 = vmatprep.subr.bf16.mxu1 %v4850_v0  ;;  %4182 = vmatprep.subr.bf16.mxu0 %v4850_v0 }
 0xe34   : > { %v2482_v45 = vpop.trf.xlu0 }
 0xe35   : > { %4167 = vmatmul.mubr.msk.bf16.vlgmr.msra.gmra.mrb[32].mxu1 %vm1148_vm3, %v2399_v7  ;;  %4173 = vmatmul.mubr.msk.bf16.vlgmr.msra.gmra.mrb[40].mxu0 %vm1148_vm3, %v2401_v37  ;;  %v2632_v46 = vsel %vm1152_vm2, %v2482_v45, 0 }
 0xe36   : > { %4177 = vmatpush3.bf16.msra.mxu1 %v2632_v46  ;;  %4178 = vmatprep.mubr.msk.bf16.mxu1 %vm4851_vm0, %v4850_v0 }
 0xe37   : > { %4184 = vmatprep.mubr.msk.bf16.mxu0 %vm4851_vm0, %v4850_v0  ;;  %4188 = vmatprep.subr.bf16.mxu1 %v4850_v0 }
 0xe3d   : > { %4179 = vmatmul.mubr.msk.bf16.vlgmr.msra.gmra.mrb[36].mxu1 %vm1148_vm3, %v2403_v40 }
 0xe3e   : > { %4190 = vmatprep.mubr.msk.bf16.mxu1 %vm4851_vm0, %v4850_v0 }
 0xeb7   : > { %v2530_v55 = vpop.f32.mrb[36].mxu0 }
 0xeb8   : > { %v2674_v56 = vmul.f32 0.35355338, %v2530_v55  ;;  %v4162_v57 = vpop.f32.mrb[37].mxu0 }
 0xeb9   : > { %v2533_v58 = vpop.f32.mrb[38].mxu0 }
 0xeba   : > { %v4163_v59 = vpop.f32.mrb[39].mxu0  ;;  %v2678_v60 = vsel %vm1338_vm4, %v2674_v56, -inf }
 0xebb   : > { %2679 = vmax.xlane.f32.xlu1 %v2678_v60 }
 0xf08   : > { %v2576_v61 = vpop.f32.mrb[32].mxu1  ;;  %v2622_v62 = vpop.f32.mrb[40].mxu0 }
 0xf09   : > { %v2675_v63 = vmul.f32 0.35355338, %v2576_v61  ;;  %v2676_v1 = vmul.f32 0.35355338, %v2622_v62  ;;  %v4168_v2 = vpop.f32.mrb[33].mxu1  ;;  %v4174_v3 = vpop.f32.mrb[41].mxu0 }
 0xf0a   : > { %v2579_v4 = vpop.f32.mrb[34].mxu1  ;;  %v2625_v5 = vpop.f32.mrb[42].mxu0 }
 0xf0b   : > { %v4169_v6 = vpop.f32.mrb[35].mxu1  ;;  %v4175_v9 = vpop.f32.mrb[43].mxu0  ;;  %v2681_v10 = vsel %vm1338_vm4, %v2675_v63, -inf  ;;  %v2684_v11 = vsel %vm1338_vm4, %v2676_v1, -inf }
 0xf0c   : > { %2682 = vmax.xlane.f32.xlu0 %v2681_v10  ;;  %2685 = vmax.xlane.f32.xlu1 %v2684_v11 }
 0xf10   : > { %v2668_v13 = vpop.f32.mrb[36].mxu1 }
 0xf11   : > { %v2677_v14 = vmul.f32 0.35355338, %v2668_v13  ;;  %v4180_v15 = vpop.f32.mrb[37].mxu1 }
 0xf12   : > { %v2671_v16 = vpop.f32.mrb[38].mxu1 }
 0xf13   : > { %v4181_v17 = vpop.f32.mrb[39].mxu1  ;;  %v2687_v18 = vsel %vm1338_vm4, %v2677_v14, -inf }
 0xf14   : > { %2688 = vmax.xlane.f32.xlu0 %v2687_v18 }
 0xf1d   : > { %2417 = vrot.lane.b32.xlu1 %v2415_v54, %s4853_s9  ;;  %s5839_s9 = smov 8  }
 0xf21   : > { %2423 = vrot.lane.b32.xlu1 %v2415_v54, %s4852_s7  ;;  %s5838_s7 = smov 16  }
 0xf48   : > { %v2680_v19 = vpop.xlane.xlu1 %2679 }
 0xf49   : > { %v2690_v20 = vsub.f32 %v2674_v56, %v2680_v19 }
 0xf4b   : > { %v2694_v21 = vmul.f32 1.442695, %v2690_v20 }
 0xf4d   : > { %4444 = vpow2.f32 %v2694_v21 }
 0xf57   : > { %v4445_v22 = vpop.eup %4444 }
 0xf58   : > { %v2702_v23 = vsel %vm1338_vm4, %v4445_v22, 0.0 }
 0xf59   : > { %2703 = vadd.xlane.f32.xlu0 %v2702_v23 }
 0xf99   : > { %v2683_v24 = vpop.xlane.xlu0 %2682  ;;  %v2686_v26 = vpop.xlane.xlu1 %2685 }
 0xf9a   : > { %v2691_v27 = vsub.f32 %v2675_v63, %v2683_v24  ;;  %v2692_v8 = vsub.f32 %v2676_v1, %v2686_v26 }
 0xf9c   : > { %v2696_v28 = vmul.f32 1.442695, %v2691_v27  ;;  %v2698_v29 = vmul.f32 1.442695, %v2692_v8 }
 0xf9d   : > { %v2418_v44 = vpop.permute.xlu1 %2417 }
 0xf9e   : > { %4446 = vpow2.f32 %v2696_v28 }
 0xf9f   : > { %4448 = vpow2.f32 %v2698_v29 }
 0xfa1   : > { %v2689_v35 = vpop.xlane.xlu0 %2688  ;;  %v2424_v45 = vpop.permute.xlu1 %2423 }
 0xfa2   : > { %v2693_v36 = vsub.f32 %v2677_v14, %v2689_v35 }
 0xfa4   : > { %v2700_v37 = vmul.f32 1.442695, %v2693_v36 }
 0xfa6   : > { %4450 = vpow2.f32 %v2700_v37 }
 0xfa8   : > { %v4447_v30 = vpop.eup %4446 }
 0xfa9   : > { %v4449_v32 = vpop.eup %4448  ;;  %v2705_v33 = vsel %vm1338_vm4, %v4447_v30, 0.0 }
 0xfaa   : > { %2706 = vadd.xlane.f32.xlu0 %v2705_v33  ;;  %v2708_v34 = vsel %vm1338_vm4, %v4449_v32, 0.0 }
 0xfab   : > { %2709 = vadd.xlane.f32.xlu1 %v2708_v34 }
 0xfb0   : > { %v4451_v38 = vpop.eup %4450 }
 0xfb1   : > { %v2711_v39 = vsel %vm1338_vm4, %v4451_v38, 0.0 }
 0xfc0   : > { %2420 = vrot.lane.b32.xlu0 %v2415_v54, %s4854_s2  ;;  %s5840_s2 = smov 24  }
 0xfd8   : > { %2726 = vxpose.xlu1.c.b16.start.end [1/1] (short) (narrow) %v2415_v54, 16 }
 0xfdf   : > { %2712 = vadd.xlane.f32.xlu0 %v2711_v39  ;;  %v4414_v39 = vld [vmem:[#allocation11 + $0x10] sm:$0xff]  }
 0xfe6   : > { %v2704_v7 = vpop.xlane.xlu0 %2703 }
 0xfe7   : > { %4452 = vrcp.f32 %v2704_v7 }
 0xff1   : > { %v4453_v40 = vpop.eup %4452 }
 0xff2   : > { %v2718_v41 = vmul.f32 %v4453_v40, %v4445_v22 }
 0xff4   : > { %v2722_v42 = vpack.c.bf16 %v2718_v41, %v2718_v41 }
 0xff6   : > { %v2794_v43 = vsel %vm1338_vm4, %v2722_v42, 0 }
 0xff7   : > { %4183 = vmatpush3.bf16.xpose.msra.mxu0 %v2794_v43 }
 0xff8   : > { %4194 = vmatprep.subr.bf16.mxu0 %v4850_v0 }
0x100c   : > { %2742 = vxpose.xlu0.c.b16.start.end [1/1] (short) (narrow) %v2418_v44, 16 }
0x1037   : > { %v2707_v46 = vpop.xlane.xlu0 %2706 }
0x1038   : > { %4454 = vrcp.f32 %v2707_v46  ;;  %v2710_v47 = vpop.xlane.xlu1 %2709 }
0x1039   : > { %4456 = vrcp.f32 %v2710_v47  ;;  %v4415_v47 = vld [vmem:[#allocation11 + $0x18] sm:$0xff]  }
0x103b   : > { %v2421_v48 = vpop.permute.xlu0 %2420 }
0x103c   : > { %2758 = vxpose.xlu1.c.b16.start.end [1/1] (short) (narrow) %v2421_v48, 16 }
0x103e   : > { %v2734_v49 = vpop.trf.xlu1 }
0x103f   : > { %4185 = vmatmul.mubr.msk.bf16.vlgmr.msra.gmra.mrb[44].mxu0 %vm1338_vm4, %v2734_v49 }
0x1040   : > { %2774 = vxpose.xlu1.c.b16.start.end [1/1] (short) (narrow) %v2424_v45, 16  ;;  %4196 = vmatprep.mubr.msk.bf16.mxu0 %vm4851_vm0, %v4850_v0 }
0x1042   : > { %v4455_v50 = vpop.eup %4454 }
0x1043   : > { %v4457_v51 = vpop.eup %4456  ;;  %v2719_v52 = vmul.f32 %v4455_v50, %v4447_v30 }
0x1044   : > { %v2720_v53 = vmul.f32 %v4457_v51, %v4449_v32 }
0x1045   : > { %v2723_v54 = vpack.c.bf16 %v2719_v52, %v2719_v52 }
0x1046   : > { %v2724_v55 = vpack.c.bf16 %v2720_v53, %v2720_v53 }
0x1047   : > { %v2840_v56 = vsel %vm1338_vm4, %v2723_v54, 0 }
0x1048   : > { %4189 = vmatpush3.bf16.xpose.msra.mxu1 %v2840_v56  ;;  %v2886_v57 = vsel %vm1338_vm4, %v2724_v55, 0 }
0x1049   : > { %4195 = vmatpush3.bf16.xpose.msra.mxu0 %v2886_v57  ;;  %4200 = vmatprep.subr.bf16.mxu1 %v4850_v0 }
0x104a   : > { %4206 = vmatprep.subr.bf16.mxu0 %v4850_v0 }
0x106c   : > { %v2713_v58 = vpop.xlane.xlu0 %2712 }
0x106d   : > { %4458 = vrcp.f32 %v2713_v58 }
0x1072   : > { %v2750_v59 = vpop.trf.xlu0 }
0x1073   : > { %4191 = vmatmul.mubr.msk.bf16.vlgmr.msra.gmra.mrb[40].mxu1 %vm1338_vm4, %v2750_v59 }
0x1074   : > { %4202 = vmatprep.mubr.msk.bf16.mxu1 %vm4851_vm0, %v4850_v0 }
0x1077   : > { %v4459_v60 = vpop.eup %4458 }
0x1078   : > { %v2721_v61 = vmul.f32 %v4459_v60, %v4451_v38 }
0x107a   : > { %v2725_v62 = vpack.c.bf16 %v2721_v61, %v2721_v61 }
0x107c   : > { %v2932_v63 = vsel %vm1338_vm4, %v2725_v62, 0 }
0x107d   : > { %4201 = vmatpush3.bf16.xpose.msra.mxu1 %v2932_v63 }
0x107e   : > { %4214 = vmatprep.subr.bf16.mxu1 %v4850_v0 }
0x10a2   : > { %v2766_v1 = vpop.trf.xlu1 }
0x10a3   : > { %4197 = vmatmul.mubr.msk.bf16.vlgmr.msra.gmra.mrb[48].mxu0 %vm1338_vm4, %v2766_v1 }
0x10a4   : > { %4210 = vmatprep.mubr.msk.bf16.mxu0 %vm4851_vm0, %v4850_v0  ;;  %4207 = vmatpush3.bf16.msra.mxu0 %v4414_v39 }
0x10a5   : > { %4208 = vmatprep.subr.bf16.mxu0 %v4850_v0 }
0x10a6   : > { %v2782_v2 = vpop.trf.xlu1 }
0x10a7   : > { %4203 = vmatmul.mubr.msk.bf16.vlgmr.msra.gmra.mrb[44].mxu1 %vm1338_vm4, %v2782_v2 }
0x10a8   : > { %4218 = vmatprep.mubr.msk.bf16.mxu1 %vm4851_vm0, %v4850_v0  ;;  %4209 = vmatpush3.bf16.msra.mxu0 %v4415_v47 }
0x10a9   : > { %4222 = vmatprep.subr.bf16.mxu0 %v4850_v0 }
0x1112   : > { %v2830_v3 = vpop.f32.mrb[44].mxu0 }
0x1113   : > { %v4186_v4 = vpop.f32.mrb[45].mxu0  ;;  %2974 = vxpose.xlu0.b32.start.end [1/1] (short) (narrow) %v2830_v3, 8 }
0x1114   : > { %v2833_v5 = vpop.f32.mrb[46].mxu0 }
0x1115   : > { %v4187_v6 = vpop.f32.mrb[47].mxu0 }
0x1116   : > { %v3918_v6 = vld [vmem:[#allocation13 + $0x1] ss:$0 sm:$0xff] }
0x1146   : > { %v2876_v9 = vpop.f32.mrb[40].mxu1 }
0x1147   : > { %v4192_v10 = vpop.f32.mrb[41].mxu1  ;;  %3006 = vxpose.xlu1.b32.start.end [1/1] (short) (narrow) %v2876_v9, 8 }
0x1148   : > { %v2879_v11 = vpop.f32.mrb[42].mxu1 }
0x1149   : > { %v4193_v13 = vpop.f32.mrb[43].mxu1 }
0x1176   : > { %v2922_v14 = vpop.f32.mrb[48].mxu0 }
0x1177   : > { %3038 = vxpose.xlu0.b32.start.end [1/1] (short) (narrow) %v2922_v14, 8  ;;  %v4198_v15 = vpop.f32.mrb[49].mxu0 }
0x1178   : > { %v2925_v16 = vpop.f32.mrb[50].mxu0 }
0x1179   : > { %v4199_v17 = vpop.f32.mrb[51].mxu0 }
0x117a   : > { %v2968_v18 = vpop.f32.mrb[44].mxu1 }
0x117b   : > { %3070 = vxpose.xlu0.b32.start.end [1/1] (short) (narrow) %v2968_v18, 8  ;;  %v4204_v19 = vpop.f32.mrb[45].mxu1 }
0x117c   : > { %v2971_v20 = vpop.f32.mrb[46].mxu1 }
0x117d   : > { %v4205_v21 = vpop.f32.mrb[47].mxu1 }
0x1193   : > { %v2990_v22 = vpop.trf.xlu0 }
0x11c7   : > { %v3022_v24 = vpop.trf.xlu1 }
0x11f7   : > { %v3054_v23 = vpop.trf.xlu0 }
0x11f8   : > { %v3102_v26 = vcombine.low %v2990_v22, %v3054_v23  ;;  %v3103_v27 = vcombine.high %v2990_v22, %v3054_v23  ;;  %v4416_v22 = vld [vmem:[#allocation14 + $0x10] sm:$0xff]   ;;  %v4417_v23 = vld [vmem:[#allocation14 + $0x18] sm:$0xff]  }
0x11f9   : > { %4215 = vmatpush3.bf16.msra.mxu1 %v4416_v22  ;;  %v3950_v22 = vld [vmem:[%s5844_s1] ss:$0 sm:$0xff]  ;;  %s4748_s1 = scalar_lea.vmem %s5689_s0, 128 }
0x11fa   : > { %v3110_v30 = vrot.slane %v3102_v26, %v5435_v25  ;;  %v3117_v32 = vrot.slane %v3103_v27, %v5435_v25  ;;  %4216 = vmatprep.subr.bf16.mxu1 %v4850_v0  ;;  %p4749_p12 = scmp.ne.s32.totalorder %s5689_s0, %s4748_s1  ;;  %p4756_p4 = scmp.lt.s32.totalorder %s4754_s27, %s4748_s1 }
0x11fb   : > { %v3086_v8 = vpop.trf.xlu0 }
0x11fc   : > { %v3118_v28 = vcombine.low %v3022_v24, %v3086_v8  ;;  %v3119_v29 = vcombine.high %v3022_v24, %v3086_v8  ;;  %v4419_v24 = vld [vmem:[%s5743_s12 + $0x28] sm:$0xff]   ;;  %p4750_p3 = pnand %p4749_p12, %p5847_p13  ;;  %p4757_p8 = por %p4756_p4, %p4755_p9 }
0x11fd   : > { %4217 = vmatpush3.bf16.msra.mxu1 %v4417_v23 }
0x11fe   : > { %v3126_v33 = vrot.slane %v3118_v28, %v5435_v25  ;;  %v3133_v34 = vrot.slane %v3119_v29, %v5435_v25  ;;  %4234 = vmatprep.subr.bf16.mxu1 %v4850_v0  ;;  %v3924_v29 = vld [vmem:[%s5834_s21 + $0x1] ss:$0 sm:$0xff]  ;;  %p4751_p6 = pneg %p4750_p3 }
0x1200   : > { %v3134_v35 = vcombine.low %v3110_v30, %v3126_v33  ;;  %v3135_v36 = vcombine.high %v3110_v30, %v3126_v33  ;;  %v3150_v37 = vcombine.low %v3117_v32, %v3133_v34  ;;  %v3151_v38 = vcombine.high %v3117_v32, %v3133_v34  ;;  %v3925_v32 = vld [vmem:[%s5835_s19 + $0x1] ss:$0 sm:$0xff]  ;;  %p4758_p0 = pnand %p4757_p8, %p4751_p6 }
0x1202   : > { %v3142_v7 = vrot.slane %v3134_v35, %v5437_v31  ;;  %v3149_v40 = vrot.slane %v3135_v36, %v5437_v31  ;;  %v3158_v41 = vrot.slane %v3150_v37, %v5437_v31  ;;  %v3165_v42 = vrot.slane %v3151_v38, %v5437_v31  ;;  %v4420_v36 = vld [vmem:[%s5743_s12 + $0x30] sm:$0xff]   ;;  %v4421_v37 = vld [vmem:[%s5743_s12 + $0x38] sm:$0xff]  }
0x1203   : > { %v3926_v38 = vld [vmem:[#allocation16 + $0x1] ss:$0 sm:$0xff] }
0x1204   : > { %v3170_v43 = vcombine.low %v3142_v7, %v3149_v40  ;;  %v3916_v44 = vcombine.high %v3142_v7, %v3149_v40  ;;  %v3186_v45 = vcombine.low %v3158_v41, %v3165_v42  ;;  %v3917_v46 = vcombine.high %v3158_v41, %v3165_v42 }
0x1206   : > { %v3177_v48 = vrot.slane %v3170_v43, %v5435_v25  ;;  %v3185_v49 = vrot.slane %v3916_v44, %v5435_v25  ;;  %v3193_v50 = vrot.slane %v3186_v45, %v5435_v25  ;;  %v3201_v51 = vrot.slane %v3917_v46, %v5435_v25  ;;  %v3938_v45 = vld [vmem:[#allocation17 + $0x1] ss:$0 sm:$0xff] }
0x1208   : > { %v3203_v52 = vcombine.high %v3177_v48, %v3185_v49  ;;  %v3219_v53 = vcombine.high %v3193_v50, %v3201_v51  ;;  %v3202_v54 = vcombine.low %v3177_v48, %v3185_v49  ;;  %v3218_v55 = vcombine.low %v3193_v50, %v3201_v51 }
0x120a   : > { %v3217_v56 = vrot.slane %v3203_v52, %v5437_v31  ;;  %v3233_v57 = vrot.slane %v3219_v53, %v5437_v31  ;;  %v3210_v58 = vrot.slane %v3202_v54, %v5437_v31  ;;  %v3226_v59 = vrot.slane %v3218_v55, %v5437_v31 }
0x120c   : > { %v3236_v60 = vcombine.low %v3217_v56, %v3233_v57  ;;  %v3235_v61 = vcombine.high %v3210_v58, %v3226_v59  ;;  %v3234_v62 = vcombine.low %v3210_v58, %v3226_v59  ;;  %v3237_v25 = vcombine.high %v3217_v56, %v3233_v57 }
0x120e   : > { %3243 = vrot.lane.b32.xlu0 %v3236_v60, %s5838_s7  ;;  %3239 = vrot.lane.b32.xlu1 %v3235_v61, %s5839_s9  ;;  %s5846_s9 = sld [smem:[#allocation47_spill]] }
0x1212   : > { %3247 = vrot.lane.b32.xlu1 %v3237_v25, %s5840_s2  ;;  %s5843_s2 = sld [smem:[#allocation44_spill]] }
0x1280   : > { %v3240_v63 = vpop.permute.xlu1 %3239  ;;  %v3244_v1 = vpop.permute.xlu0 %3243 }
0x1281   : > { %v3250_v2 = vsel %vm1148_vm3, %v3234_v62, %v3240_v63  ;;  %v3946_v62 = vld [vmem:[%s5836_s14 + $0x1] ss:$0 sm:$0xff] }
0x1282   : > { %v3251_v4 = vsel %vm1338_vm4, %v3250_v2, %v3244_v1  ;;  %v3947_v63 = vld [vmem:[%s5837_s24 + $0x1] ss:$0 sm:$0xff] }
0x1284   : > { %v3248_v3 = vpop.permute.xlu1 %3247 }
0x1285   : > { %v3252_v5 = vsel %vm1913_vm5, %v3251_v4, %v3248_v3 }
0x1286   : > { %v3253_v31 = vpack.c.bf16 %v3252_v5, %v3252_v5 }
0x1288   : > { %4211 = vmatmul.mubr.msk.bf16.vlgmr.msra.gmra.mrb[52].mxu0 %vm879_vm1, %v3253_v31 }
0x1289   : > { %4230 = vmatprep.mubr.msk.bf16.mxu0 %vm4851_vm0, %v4850_v0 }
0x135b   : > { %v3316_v9 = vpop.f32.mrb[52].mxu0 }
0x135c   : > { %v3317_v10 = vadd.f32 %v3918_v6, %v3316_v9  ;;  %v4212_v11 = vpop.f32.mrb[53].mxu0 }
0x135d   : > { %v3319_v13 = vpop.f32.mrb[54].mxu0  ;;  %v4423_v11 = vld [vmem:[%s5841_s25 + $0x8] sm:$0xff]  }
0x135e   : > { %v4213_v14 = vpop.f32.mrb[55].mxu0  ;;  %v3322_v15 = vadd.f32 %v3317_v10, %v5515_v12  ;;  %v4418_v12 = vld [vmem:[%s5743_s12 + $0x20] sm:$0xff]  }
0x135f   : > { %4223 = vmatpush3.bf16.msra.mxu0 %v4418_v12  ;;  %v4422_v10 = vld [vmem:[%s5841_s25] sm:$0xff]  }
0x1360   : > { %v3327_v16 = vsel %vm879_vm1, %v3322_v15, 0.0  ;;  %4224 = vmatprep.subr.bf16.mxu0 %v4850_v0 }
0x1361   : > { %3328 = vadd.xlane.f32.xlu1 %v3327_v16 }
0x1363   : > { %4225 = vmatpush3.bf16.msra.mxu0 %v4419_v24 }
0x1364   : > { %4226 = vmatprep.subr.bf16.mxu0 %v4850_v0 }
0x1367   : > { %4227 = vmatpush3.bf16.msra.mxu0 %v4420_v36 }
0x1368   : > { %4228 = vmatprep.subr.bf16.mxu0 %v4850_v0 }
0x136b   : > { %4229 = vmatpush3.bf16.msra.mxu0 %v4421_v37 }
0x13ee   : > { %v3329_v17 = vpop.xlane.xlu1 %3328 }
0x13ef   : > { %v3330_v18 = vmul.f32 0.03125, %v3329_v17  ;;  %v3948_v17 = vld [vmem:[%s5842_s4] ss:$0 sm:$0xff] }
0x13f1   : > { %v3331_v19 = vsub.f32 %v3322_v15, %v3330_v18 }
0x13f3   : > { %v3332_v20 = vmul.f32 %v3331_v19, %v3331_v19 }
0x13f5   : > { %v3333_v21 = vsel %vm879_vm1, %v3332_v20, 0.0 }
0x13f6   : > { %3334 = vadd.xlane.f32.xlu0 %v3333_v21 }
0x1483   : > { %v3335_v26 = vpop.xlane.xlu0 %3334 }
0x1484   : > { %v3336_v27 = vmul.f32 0.03125, %v3335_v26 }
0x1486   : > { %v3337_v8 = vadd.f32 1e-05, %v3336_v27 }
0x1488   : > { %4460 = vrsqrt.f32 %v3337_v8 }
0x1492   : > { %v4461_v28 = vpop.eup %4460 }
0x1493   : > { %v3339_v30 = vmul.f32 %v4461_v28, %v3331_v19  ;;  %v3949_v19 = vld [vmem:[%s5843_s2] ss:$0 sm:$0xff]  ;;  %s5687_s2 = scalar_lea.hbm %s5846_s9, %s3955_s10 }
0x1495   : > { %v3346_v33 = vmul.f32 %v3924_v29, %v3339_v30 }
0x1497   : > { %v3353_v34 = vadd.f32 %v3925_v32, %v3346_v33 }
0x1499   : > { %v3354_v35 = vpack.c.bf16 %v3353_v34, %v3353_v34 }
0x149b   : > { %4219 = vmatmul.mubr.msk.bf16.vlgmr.msra.gmra.mrb[48].mxu1 %vm879_vm1, %v3354_v35 }
0x149c   : > { %4238 = vmatprep.mubr.msk.bf16.mxu1 %vm4851_vm0, %v4850_v0  ;;  %4235 = vmatpush3.bf16.msra.mxu1 %v4422_v10 }
0x149d   : > { %4236 = vmatprep.subr.bf16.mxu1 %v4850_v0 }
0x14a0   : > { %4237 = vmatpush3.bf16.msra.mxu1 %v4423_v11 }
0x156e   : > { %v3417_v39 = vpop.f32.mrb[48].mxu1 }
0x156f   : > { %v3418_v7 = vadd.f32 %v3926_v38, %v3417_v39  ;;  %v4220_v40 = vpop.f32.mrb[49].mxu1 }
0x1570   : > { %v3420_v41 = vpop.f32.mrb[50].mxu1 }
0x1571   : > { %v3423_v42 = vmax.f32 %v3418_v7, 0.0  ;;  %v4221_v43 = vpop.f32.mrb[51].mxu1 }
0x1573   : > { %v3424_v44 = vpack.c.bf16 %v3423_v42, %v3423_v42 }
0x1575   : > { %4231 = vmatmul.mubr.msk.bf16.vlgmr.msra.gmra.mrb[56].mxu0 %vm2121_vm6, %v3424_v44 }
0x1648   : > { %v3503_v46 = vpop.f32.mrb[56].mxu0 }
0x1649   : > { %v3504_v47 = vadd.f32 %v3938_v45, %v3503_v46  ;;  %v4232_v48 = vpop.f32.mrb[57].mxu0 }
0x164a   : > { %v3506_v49 = vpop.f32.mrb[58].mxu0 }
0x164b   : > { %v4233_v50 = vpop.f32.mrb[59].mxu0  ;;  %v3509_v51 = vadd.f32 %v3504_v47, %v3353_v34 }
0x164d   : > { %v3514_v52 = vsel %vm879_vm1, %v3509_v51, 0.0 }
0x164e   : > { %3515 = vadd.xlane.f32.xlu1 %v3514_v52 }
0x16db   : > { %v3516_v53 = vpop.xlane.xlu1 %3515 }
0x16dc   : > { %v3517_v54 = vmul.f32 0.03125, %v3516_v53 }
0x16de   : > { %v3518_v55 = vsub.f32 %v3509_v51, %v3517_v54 }
0x16e0   : > { %v3519_v56 = vmul.f32 %v3518_v55, %v3518_v55 }
0x16e2   : > { %v3520_v57 = vsel %vm879_vm1, %v3519_v56, 0.0 }
0x16e3   : > { %3521 = vadd.xlane.f32.xlu0 %v3520_v57 }
0x1770   : > { %v3522_v58 = vpop.xlane.xlu0 %3521 }
0x1771   : > { %v3523_v59 = vmul.f32 0.03125, %v3522_v58 }
0x1773   : > { %v3524_v60 = vadd.f32 1e-05, %v3523_v59 }
0x1775   : > { %4462 = vrsqrt.f32 %v3524_v60 }
0x177f   : > { %v4463_v61 = vpop.eup %4462 }
0x1780   : > { %v3526_v25 = vmul.f32 %v4463_v61, %v3518_v55 }
0x1782   : > { %v3533_v1 = vmul.f32 %v3946_v62, %v3526_v25 }
0x1784   : > { %v3540_v2 = vadd.f32 %v3947_v63, %v3533_v1 }
0x1786   : > { %v3543_v3 = vsel %vm879_vm1, %v3540_v2, 0.0 }
0x1787   : > { %3544 = vadd.xlane.f32.xlu1 %v3543_v3 }
0x1814   : > { %v3545_v4 = vpop.xlane.xlu1 %3544 }
0x1815   : > { %v3546_v5 = vmul.f32 0.03125, %v3545_v4 }
0x1817   : > { %v3547_v31 = vsub.f32 %v3540_v2, %v3546_v5 }
0x1819   : > { %v3548_v6 = vmul.f32 %v3547_v31, %v3547_v31 }
0x181b   : > { %v3549_v9 = vsel %vm879_vm1, %v3548_v6, 0.0 }
0x181c   : > { %3550 = vadd.xlane.f32.xlu0 %v3549_v9 }
0x18a9   : > { %v3551_v13 = vpop.xlane.xlu0 %3550 }
0x18aa   : > { %v3552_v14 = vmul.f32 0.03125, %v3551_v13 }
0x18ac   : > { %v3553_v15 = vadd.f32 1e-05, %v3552_v14 }
0x18ae   : > { %4464 = vrsqrt.f32 %v3553_v15 }
0x18b8   : > { %v4465_v16 = vpop.eup %4464 }
0x18b9   : > { %v3555_v18 = vmul.f32 %v4465_v16, %v3547_v31 }
0x18bb   : > { %v3562_v20 = vmul.f32 %v3948_v17, %v3555_v18 }
0x18bd   : > { %v3569_v21 = vadd.f32 %v3949_v19, %v3562_v20 }
0x18bf   : > { %v3570_v0 = vpack.c.bf16 %v3569_v21, %v3569_v21 }
0x18c1   : > { %4239 = vmatmul.mubr.msk.bf16.vlgmr.msra.gmra.mrb[52].mxu1 %vm879_vm1, %v3570_v0 }
0x1994   : > { %v3631_v23 = vpop.f32.mrb[52].mxu1 }
0x1995   : > { %v3632_v12 = vadd.f32 %v3950_v22, %v3631_v23  ;;  %v4240_v24 = vpop.f32.mrb[53].mxu1 }
0x1996   : > { %v3634_v26 = vpop.f32.mrb[54].mxu1 }
0x1997   : > { %3637 = vst [vmem:[%s844_s15] sm:$0xff] %v3632_v12  ;;  %v4241_v27 = vpop.f32.mrb[55].mxu1 }
0x1998   : > { %4761 = shalt.err (!%p4758_p0)
}
0x1999   : > { %s4762_s10 = scalar_lea.hbm %s5687_s2, 128  ;;  %s4766_s4 = scalar_lea.hbm %s5846_s9, 256 }
0x199a   : > { %p4763_p5 = scmp.ne.s32.totalorder %s5687_s2, %s4762_s10  ;;  %p4767_p10 = scmp.lt.u32.totalorder %s5687_s2, %s5846_s9 }
0x199b   : > { %p4768_p1 = scmp.lt.u32.totalorder %s4766_s4, %s4762_s10  ;;  %p4770_p12 = scmp.lt.u32.totalorder %s4762_s10, %s5687_s2 }
0x199c   : > { %p4764_p2 = pnand %p4763_p5, %p5847_p13 }
0x199d   : > { %p4769_p11 = por %p4768_p1, %p4767_p10 }
0x199e   : > { %p4765_p7 = pneg %p4764_p2 }
0x199f   : > { %p4771_p3 = por %p4770_p12, %p4769_p11 }
0x19a1   : > { %p4772_p6 = pnand %p4771_p3, %p4765_p7 }
0x19a3   : > { %4775 = shalt.err (!%p4772_p6)
}
0x19a4   : > { %4280 = dma.vmem_to_hbm [thread:$0]  (%p5847_p13), %s5689_s0, 128, %s5687_s2, %s3639_s23  }
0x19a5 PF: > { %s3664_s1 = sand.u32 1, %s4822_s3   ;;  %p5848_p9 = scmp.ne.s32.totalorder %s5817_s17, 0 }
0x19a6   : > { %p5849_p4 = scmp.ge.s32.totalorder %s4834_s30, 2  ;;  %s3665_s6 = scalar_lea.sflag [#allocation4], %s3664_s1 }
0x19a8   : > { %p4315_p8 = pnand %p5849_p4, %p5848_p9 }
0x19aa   : > { %4817 = dma.done.wait (!%p4315_p8), %s3665_s6, 128  }
0x19ab   : > { %4819 = vsyncadd (!%p4315_p8), %s3665_s6, 4294967168  ;;  %p40_p0 = scmp.ge.s32.totalorder %s5229_s5, 4   ;;  %s5850_s3 = smov %s4826_s28 }
0x19ac   : > { %s5851_s28 = smov %s4830_s29  ;;  %s5852_s29 = smov %s5241_s18 }
0x19ad   : > { %s5853_s30 = smov %s5229_s5  ;;  %42 = sbr.rel (!%p40_p0) target bundleno = 32 (0x20), region = 208 }
0x19b4   :  { %3670 = vsyncpa [#allocation3], 1 }
0x19b5   :  { %3672 = vsyncpa [#allocation3 + $0x1], 1 }
0x19b6   :  { %3673 = vsyncpa [#allocation6], 1 }
0x19b7   :  { %3674 = vsyncpa [#allocation9], 1 }
0x19b8   :  { %3675 = vsyncpa [#allocation12], 1 }
0x19b9   :  { %3676 = vsyncpa [#allocation15], 1 }
0x19ba   :  { %3677 = vsyncpa [#allocation18], 1 }
0x19bb   :  { %3678 = vsyncpa [#allocation4], 1 }
0x19bc   :  { %3680 = vsyncpa [#allocation4 + $0x1], 1 }

</bundles_post_ra>
